<compile_context>
chip_gen: v7x
topology: tpu7x:2x2x1
jax: 0.10.0
libtpu: 0.0.40
codegen_flags: <defaults>
</compile_context>

<pallas_src>
import functools

import jax
import jax.numpy as jnp
from jax import lax
from jax.experimental import pallas as pl
from jax.experimental.pallas import tpu as pltpu


# PyTorch LSTM gate order is (i, f, g, o); pack as (i, f, o, g) so the three
# sigmoid gates are lane-contiguous and the tanh gate is last.
_GATE_ORDER = (0, 1, 3, 2)


def textrcnn_kernel(emb_ref,      # [T*Bp, E]  bf16, time-major flattened embeddings
                    wih_ref,      # [E, 8H]    bf16, gate/direction-packed input weights
                    whh_ref,      # [2H, 8H]   bf16, block-diagonal recurrent weights
                    b_ref,        # [1, 8H]    f32,  packed bias (b_ih + b_hh)
                    fmask_ref,    # [1, 8H]    f32,  1.0 on fwd-direction lanes, else 0.0
                    we_ref,       # [E, Lp]    bf16, fc block for embedding features
                    wh_ref,       # [2H, Lp]   bf16, fc block for [h_fwd | h_bwd]
                    fcb_ref,      # [1, Lp]    f32
                    logits_ref,   # out: [Bp, Lp] f32 (lane-dense)
                    *, seq_len, batch):
    T, Bp = seq_len, batch
    G8 = wih_ref.shape[-1]        # 8H = 4 gates x 2 directions x H
    G = G8 // 4                   # 2H: one gate block (fwd lanes then bwd lanes)

    emb = emb_ref[...]                                            # [T*Bp, E] bf16

    # ---- hoisted input projection: one wide bf16 MXU pass, f32 accumulate ----
    xw = (jnp.dot(emb, wih_ref[...], preferred_element_type=jnp.float32)
          + b_ref[...])                                           # [T*Bp, 8H] f32

    # ---- pre-blend fwd/bwd lanes once over the whole slab -------------------
    # fwd lanes keep timestep t; bwd lanes take timestep T-1-t.  Bp == 8 so
    # each timestep block is a sublane-aligned tile and the time reversal is a
    # cheap one-shot tile reorder, off the serial recurrence path.
    xw_rev = jnp.concatenate(
        [xw[(T - 1 - t) * Bp:(T - t) * Bp] for t in range(T)], axis=0)
    fmask = fmask_ref[...]
    xw_blend = xw_rev + fmask * (xw - xw_rev)                     # [T*Bp, 8H]

    # ---- max over time of relu(embeddings): one pass, not loop-carried ------
    max_e = emb[0:Bp]
    for t in range(1, T):
        max_e = jnp.maximum(max_e, emb[t * Bp:(t + 1) * Bp])
    max_e = jax.nn.relu(max_e)        # max_t relu(x_t) == relu(max_t x_t)

    whh = whh_ref[...]                                            # [2H, 8H] bf16
    h = jnp.zeros((Bp, G), jnp.float32)        # [h_fwd | h_bwd]
    c = jnp.zeros((Bp, G), jnp.float32)        # [c_fwd | c_bwd]
    max_h = jnp.zeros((Bp, G), jnp.float32)    # 0-init == running max of relu(h)

    # ---- fused bidirectional recurrence, trace-time unrolled (T small/static)
    # Packed gate order is (i, f, o, g): one sigmoid sweep + one tanh per step.
    for k in range(T):
        x_cat = xw_blend[k * Bp:(k + 1) * Bp]                     # [Bp, 8H]
        if k == 0:
            pre = x_cat                        # h0 == 0: skip the recurrent matmul
        else:
            pre = x_cat + jnp.dot(h.astype(jnp.bfloat16), whh,
                                  preferred_element_type=jnp.float32)
        sig = jax.nn.sigmoid(pre[:, 0:3 * G])                     # gates i, f, o
        gi = sig[:, 0 * G:1 * G]
        gf = sig[:, 1 * G:2 * G]
        go = sig[:, 2 * G:3 * G]
        gg = jnp.tanh(pre[:, 3 * G:4 * G])                        # gate g
        c = gf * c + gi * gg
        h = go * jnp.tanh(c)
        max_h = jnp.maximum(max_h, h)          # == max_t relu(h_t) with 0 init

    # TODO(synk): nn.Dropout is identity in eval mode; train-mode stochastic dropout not implemented.

    # fc on block-wise max-pooled features (bf16 MXU operands, f32 accumulate):
    #   fc(max_t relu([x | h_f | h_b])) == max_e @ We + [max_hf|max_hb] @ Wh + b
    logits_ref[...] = (
        jnp.dot(max_e, we_ref[...], preferred_element_type=jnp.float32)
        + jnp.dot(max_h.astype(jnp.bfloat16), wh_ref[...],
                  preferred_element_type=jnp.float32)
        + fcb_ref[...])


# -------------------- one-time weight packing (off the per-call path) --------

def _pack_gate_dir(wf, wb):
    """[4, ..., H] x2 (PyTorch gate order i,f,g,o) -> [..., 8H].

    Packed gate order is (i,f,o,g); inside each 2H gate block the first H
    lanes belong to the forward direction, the last H to the backward one.
    """
    cols = []
    for g in _GATE_ORDER:
        cols.append(wf[g])
        cols.append(wb[g])
    return jnp.concatenate(cols, axis=-1)


def _pack_hh_blockdiag(whh_f, whh_b):
    """[4, H, H] x2 -> [2H, 8H] block-diagonal so that
    [h_f | h_b] @ result == per-gate (h_f @ W_hh_f, h_b @ W_hh_b)."""
    H = whh_f.shape[-1]
    z = jnp.zeros((H, H), whh_f.dtype)
    blocks = []
    for g in _GATE_ORDER:
        top = jnp.concatenate([whh_f[g], z], axis=1)         # fwd rows -> fwd cols
        bot = jnp.concatenate([z, whh_b[g]], axis=1)         # bwd rows -> bwd cols
        blocks.append(jnp.concatenate([top, bot], axis=0))   # [2H, 2H]
    return jnp.concatenate(blocks, axis=1)                   # [2H, 8H]


def pack_textrcnn_params(params):
    """One-time parameter prep: gate/direction packing, block-diagonal W_hh,
    FC concat + lane padding, bf16 casts.  Call once, reuse per forward call.

    NOTE: if porting real torch.nn.LSTM weights, pass b = b_ih + b_hh per
    direction (this params dict carries a single summed bias per direction).
    """
    H = params["whh_f"].shape[-1]
    E = params["fc_w_emb"].shape[0]
    L = params["fc_b"].shape[-1]
    Lp = -(-L // 128) * 128          # lane-dense logits

    wih = _pack_gate_dir(params["wih_f"], params["wih_b"]).astype(jnp.bfloat16)
    bias = _pack_gate_dir(params["b_f"], params["b_b"]).astype(jnp.float32)
    whh = _pack_hh_blockdiag(params["whh_f"], params["whh_b"]).astype(jnp.bfloat16)
    fmask = jnp.tile(
        jnp.concatenate([jnp.ones((1, H), jnp.float32),
                         jnp.zeros((1, H), jnp.float32)], axis=1), (1, 4))

    we = jnp.zeros((E, Lp), jnp.bfloat16).at[:, :L].set(
        params["fc_w_emb"].astype(jnp.bfloat16))
    wh = jnp.zeros((2 * H, Lp), jnp.bfloat16).at[:, :L].set(
        jnp.concatenate([params["fc_w_hf"], params["fc_w_hb"]],
                        axis=0).astype(jnp.bfloat16))
    fcb = jnp.zeros((1, Lp), jnp.float32).at[:, :L].set(
        params["fc_b"].astype(jnp.float32))

    return {
        "embedding": params["embedding"].astype(jnp.bfloat16),
        "wih": wih, "whh": whh, "bias": bias, "fmask": fmask,
        "we": we, "wh": wh, "fcb": fcb,
        "num_labels": L,
    }


# -------------------- per-call wrapper ---------------------------------------

def textrcnn_forward(input_ids, attention_mask, label_ids, packed, mode="eval"):
    # attention_mask is accepted (matching the torch signature) but unused by
    # the reference forward pass, exactly as in the PyTorch module.
    del attention_mask
    B, T = input_ids.shape
    E = packed["embedding"].shape[1]
    L = packed["num_labels"]
    Lp = packed["fcb"].shape[-1]
    Bp = -(-B // 8) * 8              # pad batch to one sublane tile per timestep

    # Glue outside the kernel: embedding gather, batch pad, time-major flatten.
    emb = jnp.take(packed["embedding"], input_ids, axis=0)        # [B, T, E] bf16
    emb = jnp.pad(emb, ((0, Bp - B), (0, 0), (0, 0)))             # zero padded rows
    emb_flat = jnp.transpose(emb, (1, 0, 2)).reshape(T * Bp, E)   # row = t*Bp + b

    vmem = lambda: pl.BlockSpec(memory_space=pltpu.MemorySpace.VMEM)
    logits_p = pl.pallas_call(
        functools.partial(textrcnn_kernel, seq_len=T, batch=Bp),
        out_shape=jax.ShapeDtypeStruct((Bp, Lp), jnp.float32),
        in_specs=[vmem() for _ in range(8)],
        out_specs=vmem(),
    )(emb_flat, packed["wih"], packed["whh"], packed["bias"], packed["fmask"],
      packed["we"], packed["wh"], packed["fcb"])
    logits = logits_p[:B, :L]        # drop batch padding + lane padding

    # CrossEntropyLoss (mean over batch) on the kernel logits — pure epilogue,
    # kept in the JAX wrapper.
    logp = jax.nn.log_softmax(logits, axis=-1)
    onehot = jax.nn.one_hot(label_ids, L, dtype=logits.dtype)
    loss = -jnp.mean(jnp.sum(onehot * logp, axis=-1))

    if mode == "train":
        return loss
    return loss, jnp.argmax(logits, axis=-1), label_ids


# -------------------- pure-JAX reference (for a sanity check) ----------------

def textrcnn_reference(input_ids, label_ids, params):
    emb = params["embedding"][input_ids]                          # [B, T, E]
    B, T, _ = emb.shape
    H = params["whh_f"].shape[-1]
    xs = jnp.transpose(emb, (1, 0, 2))                            # [T, B, E]

    def run_dir(seq, wih, whh, b):
        def step(carry, x):
            h, c = carry
            lin = lambda g: x @ wih[g] + h @ whh[g] + b[g]
            i = jax.nn.sigmoid(lin(0)); f = jax.nn.sigmoid(lin(1))
            gg = jnp.tanh(lin(2)); o = jax.nn.sigmoid(lin(3))
            c = f * c + i * gg
            h = o * jnp.tanh(c)
            return (h, c), h
        (_, _), hs = lax.scan(step, (jnp.zeros((B, H)), jnp.zeros((B, H))), seq)
        return hs                                                 # [T, B, H]

    h_f = run_dir(xs, params["wih_f"], params["whh_f"], params["b_f"])
    h_b = run_dir(xs[::-1], params["wih_b"], params["whh_b"], params["b_b"])[::-1]
    feat = jnp.concatenate([xs, h_f, h_b], axis=-1)               # [T, B, E+2H]
    pooled = jnp.max(jax.nn.relu(feat), axis=0)                   # [B, E+2H]
    W = jnp.concatenate([params["fc_w_emb"], params["fc_w_hf"],
                         params["fc_w_hb"]], axis=0)
    logits = pooled @ W + params["fc_b"]
    logp = jax.nn.log_softmax(logits, axis=-1)
    onehot = jax.nn.one_hot(label_ids, logits.shape[-1])
    loss = -jnp.mean(jnp.sum(onehot * logp, axis=-1))
    return loss, logits


if __name__ == "__main__":
    # Small, module-consistent shapes.
    VOCAB, B, T = 50, 2, 8
    E = 300            # embedding_dim hard-coded in the module
    H = 32             # args.hidden_size
    L = 4              # args.num_labels

    key = jax.random.PRNGKey(0)
    ks = jax.random.split(key, 16)
    s = 0.1
    params = {
        "embedding": jax.random.normal(ks[0], (VOCAB, E), jnp.float32) * s,
        "wih_f": jax.random.normal(ks[1], (4, E, H), jnp.float32) * s,
        "whh_f": jax.random.normal(ks[2], (4, H, H), jnp.float32) * s,
        "b_f":   jax.random.normal(ks[3], (4, 1, H), jnp.float32) * s,
        "wih_b": jax.random.normal(ks[4], (4, E, H), jnp.float32) * s,
        "whh_b": jax.random.normal(ks[5], (4, H, H), jnp.float32) * s,
        "b_b":   jax.random.normal(ks[6], (4, 1, H), jnp.float32) * s,
        "fc_w_emb": jax.random.normal(ks[7], (E, L), jnp.float32) * s,
        "fc_w_hf":  jax.random.normal(ks[8], (H, L), jnp.float32) * s,
        "fc_w_hb":  jax.random.normal(ks[9], (H, L), jnp.float32) * s,
        "fc_b":     jax.random.normal(ks[10], (1, L), jnp.float32) * s,
    }

    input_ids = jax.random.randint(ks[11], (B, T), 0, VOCAB, dtype=jnp.int32)
    attention_mask = jnp.ones((B, T), jnp.int32)   # unused by the forward pass
    label_ids = jax.random.randint(ks[12], (B,), 0, L, dtype=jnp.int32)

    packed = pack_textrcnn_params(params)          # one-time packing, reused per call
    loss, preds, labels = textrcnn_forward(
        input_ids, attention_mask, label_ids, packed, mode="eval")
    jax.block_until_ready((loss, preds, labels))

    # Sanity check against a pure-JAX f32 reference (tolerance covers bf16 MXU).
    with jax.default_matmul_precision("float32"):
        ref_loss, ref_logits = textrcnn_reference(input_ids, label_ids, params)
    assert jnp.allclose(loss, ref_loss, rtol=3e-2, atol=3e-2), (loss, ref_loss)
    ref_preds = jnp.argmax(ref_logits, axis=-1)
    top2 = jnp.sort(ref_logits, axis=-1)
    near_tie = (top2[:, -1] - top2[:, -2]) < 5e-2   # allow bf16-rounding tie flips
    assert bool(jnp.all((preds == ref_preds) | near_tie)), (preds, ref_preds)

    print("KERNEL_OK")
</pallas_src>

<mosaic_0001>
module attributes {stable_mosaic.version = 11 : i64} {
  func.func @textrcnn_kernel(%arg0: memref<64x300xbf16, #tpu.memory_space<vmem>>, %arg1: memref<300x256xbf16, #tpu.memory_space<vmem>>, %arg2: memref<64x256xbf16, #tpu.memory_space<vmem>>, %arg3: memref<1x256xf32, #tpu.memory_space<vmem>>, %arg4: memref<1x256xf32, #tpu.memory_space<vmem>>, %arg5: memref<300x128xbf16, #tpu.memory_space<vmem>>, %arg6: memref<64x128xbf16, #tpu.memory_space<vmem>>, %arg7: memref<1x128xf32, #tpu.memory_space<vmem>>, %arg8: memref<8x128xf32, #tpu.memory_space<vmem>>) attributes {dimension_semantics = [], scalar_prefetch = 0 : i64, scratch_operands = 0 : i64, tpu.core_type = #tpu.core_type<tc>} {
    %c0 = arith.constant 0 : index
    %c0_0 = arith.constant 0 : index
    %0 = vector.load %arg0[%c0, %c0_0] : memref<64x300xbf16, #tpu.memory_space<vmem>>, vector<64x300xbf16>
    %c0_1 = arith.constant 0 : index
    %c0_2 = arith.constant 0 : index
    %1 = vector.load %arg1[%c0_1, %c0_2] : memref<300x256xbf16, #tpu.memory_space<vmem>>, vector<300x256xbf16>
    %cst = arith.constant dense<0.000000e+00> : vector<64x256xf32>
    %2 = tpu.matmul %0, %1, %cst {dimension_numbers = #tpu.dot_dimension_numbers<[1], [0], [0], [1], [0, 0, 1, 1], [], []>} : vector<64x300xbf16>, vector<300x256xbf16>, vector<64x256xf32> -> vector<64x256xf32>
    %c0_3 = arith.constant 0 : index
    %c0_4 = arith.constant 0 : index
    %3 = vector.load %arg3[%c0_3, %c0_4] : memref<1x256xf32, #tpu.memory_space<vmem>>, vector<1x256xf32>
    %4 = vector.broadcast %3 : vector<1x256xf32> to vector<64x256xf32>
    %5 = arith.addf %2, %4 : vector<64x256xf32>
    %6 = vector.extract_strided_slice %5 {offsets = [56, 0], sizes = [8, 256], strides = [1, 1]} : vector<64x256xf32> to vector<8x256xf32>
    %7 = vector.extract_strided_slice %5 {offsets = [48, 0], sizes = [8, 256], strides = [1, 1]} : vector<64x256xf32> to vector<8x256xf32>
    %8 = vector.extract_strided_slice %5 {offsets = [40, 0], sizes = [8, 256], strides = [1, 1]} : vector<64x256xf32> to vector<8x256xf32>
    %9 = vector.extract_strided_slice %5 {offsets = [32, 0], sizes = [8, 256], strides = [1, 1]} : vector<64x256xf32> to vector<8x256xf32>
    %10 = vector.extract_strided_slice %5 {offsets = [24, 0], sizes = [8, 256], strides = [1, 1]} : vector<64x256xf32> to vector<8x256xf32>
    %11 = vector.extract_strided_slice %5 {offsets = [16, 0], sizes = [8, 256], strides = [1, 1]} : vector<64x256xf32> to vector<8x256xf32>
    %12 = vector.extract_strided_slice %5 {offsets = [8, 0], sizes = [8, 256], strides = [1, 1]} : vector<64x256xf32> to vector<8x256xf32>
    %13 = vector.extract_strided_slice %5 {offsets = [0, 0], sizes = [8, 256], strides = [1, 1]} : vector<64x256xf32> to vector<8x256xf32>
    %14 = tpu.concatenate %6, %7, %8, %9, %10, %11, %12, %13 in 0 : vector<8x256xf32>, vector<8x256xf32>, vector<8x256xf32>, vector<8x256xf32>, vector<8x256xf32>, vector<8x256xf32>, vector<8x256xf32>, vector<8x256xf32> -> vector<64x256xf32>
    %c0_5 = arith.constant 0 : index
    %c0_6 = arith.constant 0 : index
    %15 = vector.load %arg4[%c0_5, %c0_6] : memref<1x256xf32, #tpu.memory_space<vmem>>, vector<1x256xf32>
    %16 = arith.subf %5, %14 : vector<64x256xf32>
    %17 = vector.broadcast %15 : vector<1x256xf32> to vector<64x256xf32>
    %18 = arith.mulf %17, %16 : vector<64x256xf32>
    %19 = arith.addf %14, %18 : vector<64x256xf32>
    %20 = vector.extract_strided_slice %0 {offsets = [0, 0], sizes = [8, 300], strides = [1, 1]} : vector<64x300xbf16> to vector<8x300xbf16>
    %21 = vector.extract_strided_slice %0 {offsets = [8, 0], sizes = [8, 300], strides = [1, 1]} : vector<64x300xbf16> to vector<8x300xbf16>
    %22 = arith.maximumf %20, %21 : vector<8x300xbf16>
    %23 = vector.extract_strided_slice %0 {offsets = [16, 0], sizes = [8, 300], strides = [1, 1]} : vector<64x300xbf16> to vector<8x300xbf16>
    %24 = arith.maximumf %22, %23 : vector<8x300xbf16>
    %25 = vector.extract_strided_slice %0 {offsets = [24, 0], sizes = [8, 300], strides = [1, 1]} : vector<64x300xbf16> to vector<8x300xbf16>
    %26 = arith.maximumf %24, %25 : vector<8x300xbf16>
    %27 = vector.extract_strided_slice %0 {offsets = [32, 0], sizes = [8, 300], strides = [1, 1]} : vector<64x300xbf16> to vector<8x300xbf16>
    %28 = arith.maximumf %26, %27 : vector<8x300xbf16>
    %29 = vector.extract_strided_slice %0 {offsets = [40, 0], sizes = [8, 300], strides = [1, 1]} : vector<64x300xbf16> to vector<8x300xbf16>
    %30 = arith.maximumf %28, %29 : vector<8x300xbf16>
    %31 = vector.extract_strided_slice %0 {offsets = [48, 0], sizes = [8, 300], strides = [1, 1]} : vector<64x300xbf16> to vector<8x300xbf16>
    %32 = arith.maximumf %30, %31 : vector<8x300xbf16>
    %33 = vector.extract_strided_slice %0 {offsets = [56, 0], sizes = [8, 300], strides = [1, 1]} : vector<64x300xbf16> to vector<8x300xbf16>
    %34 = arith.maximumf %32, %33 : vector<8x300xbf16>
    %cst_7 = arith.constant 0.000000e+00 : bf16
    %35 = vector.broadcast %cst_7 : bf16 to vector<8x300xbf16>
    %36 = arith.maximumf %34, %35 : vector<8x300xbf16>
    %c0_8 = arith.constant 0 : index
    %c0_9 = arith.constant 0 : index
    %37 = vector.load %arg2[%c0_8, %c0_9] : memref<64x256xbf16, #tpu.memory_space<vmem>>, vector<64x256xbf16>
    %cst_10 = arith.constant 0.000000e+00 : f32
    %38 = vector.broadcast %cst_10 : f32 to vector<8x64xf32>
    %cst_11 = arith.constant 0.000000e+00 : f32
    %39 = vector.broadcast %cst_11 : f32 to vector<8x64xf32>
    %40 = vector.extract_strided_slice %19 {offsets = [0, 0], sizes = [8, 256], strides = [1, 1]} : vector<64x256xf32> to vector<8x256xf32>
    %41 = vector.extract_strided_slice %40 {offsets = [0, 0], sizes = [8, 192], strides = [1, 1]} : vector<8x256xf32> to vector<8x192xf32>
    %42 = arith.negf %41 : vector<8x192xf32>
    %43 = math.exp %42 : vector<8x192xf32>
    %cst_12 = arith.constant 1.000000e+00 : f32
    %44 = vector.broadcast %cst_12 : f32 to vector<8x192xf32>
    %45 = arith.addf %44, %43 : vector<8x192xf32>
    %46 = arith.divf %44, %45 : vector<8x192xf32>
    %47 = vector.extract_strided_slice %46 {offsets = [0, 0], sizes = [8, 64], strides = [1, 1]} : vector<8x192xf32> to vector<8x64xf32>
    %48 = vector.extract_strided_slice %46 {offsets = [0, 64], sizes = [8, 64], strides = [1, 1]} : vector<8x192xf32> to vector<8x64xf32>
    %49 = vector.extract_strided_slice %46 {offsets = [0, 128], sizes = [8, 64], strides = [1, 1]} : vector<8x192xf32> to vector<8x64xf32>
    %50 = vector.extract_strided_slice %40 {offsets = [0, 192], sizes = [8, 64], strides = [1, 1]} : vector<8x256xf32> to vector<8x64xf32>
    %51 = math.tanh %50 : vector<8x64xf32>
    %52 = arith.mulf %48, %38 : vector<8x64xf32>
    %53 = arith.mulf %47, %51 : vector<8x64xf32>
    %54 = arith.addf %52, %53 : vector<8x64xf32>
    %55 = math.tanh %54 : vector<8x64xf32>
    %56 = arith.mulf %49, %55 : vector<8x64xf32>
    %57 = arith.maximumf %39, %56 : vector<8x64xf32>
    %58 = vector.extract_strided_slice %19 {offsets = [8, 0], sizes = [8, 256], strides = [1, 1]} : vector<64x256xf32> to vector<8x256xf32>
    %59 = arith.truncf %56 : vector<8x64xf32> to vector<8x64xbf16>
    %cst_13 = arith.constant dense<0.000000e+00> : vector<8x256xf32>
    %60 = tpu.matmul %59, %37, %cst_13 {dimension_numbers = #tpu.dot_dimension_numbers<[1], [0], [0], [1], [0, 0, 1, 1], [], []>} : vector<8x64xbf16>, vector<64x256xbf16>, vector<8x256xf32> -> vector<8x256xf32>
    %61 = arith.addf %58, %60 : vector<8x256xf32>
    %62 = vector.extract_strided_slice %61 {offsets = [0, 0], sizes = [8, 192], strides = [1, 1]} : vector<8x256xf32> to vector<8x192xf32>
    %63 = arith.negf %62 : vector<8x192xf32>
    %64 = math.exp %63 : vector<8x192xf32>
    %cst_14 = arith.constant 1.000000e+00 : f32
    %65 = vector.broadcast %cst_14 : f32 to vector<8x192xf32>
    %66 = arith.addf %65, %64 : vector<8x192xf32>
    %67 = arith.divf %65, %66 : vector<8x192xf32>
    %68 = vector.extract_strided_slice %67 {offsets = [0, 0], sizes = [8, 64], strides = [1, 1]} : vector<8x192xf32> to vector<8x64xf32>
    %69 = vector.extract_strided_slice %67 {offsets = [0, 64], sizes = [8, 64], strides = [1, 1]} : vector<8x192xf32> to vector<8x64xf32>
    %70 = vector.extract_strided_slice %67 {offsets = [0, 128], sizes = [8, 64], strides = [1, 1]} : vector<8x192xf32> to vector<8x64xf32>
    %71 = vector.extract_strided_slice %61 {offsets = [0, 192], sizes = [8, 64], strides = [1, 1]} : vector<8x256xf32> to vector<8x64xf32>
    %72 = math.tanh %71 : vector<8x64xf32>
    %73 = arith.mulf %69, %54 : vector<8x64xf32>
    %74 = arith.mulf %68, %72 : vector<8x64xf32>
    %75 = arith.addf %73, %74 : vector<8x64xf32>
    %76 = math.tanh %75 : vector<8x64xf32>
    %77 = arith.mulf %70, %76 : vector<8x64xf32>
    %78 = arith.maximumf %57, %77 : vector<8x64xf32>
    %79 = vector.extract_strided_slice %19 {offsets = [16, 0], sizes = [8, 256], strides = [1, 1]} : vector<64x256xf32> to vector<8x256xf32>
    %80 = arith.truncf %77 : vector<8x64xf32> to vector<8x64xbf16>
    %cst_15 = arith.constant dense<0.000000e+00> : vector<8x256xf32>
    %81 = tpu.matmul %80, %37, %cst_15 {dimension_numbers = #tpu.dot_dimension_numbers<[1], [0], [0], [1], [0, 0, 1, 1], [], []>} : vector<8x64xbf16>, vector<64x256xbf16>, vector<8x256xf32> -> vector<8x256xf32>
    %82 = arith.addf %79, %81 : vector<8x256xf32>
    %83 = vector.extract_strided_slice %82 {offsets = [0, 0], sizes = [8, 192], strides = [1, 1]} : vector<8x256xf32> to vector<8x192xf32>
    %84 = arith.negf %83 : vector<8x192xf32>
    %85 = math.exp %84 : vector<8x192xf32>
    %cst_16 = arith.constant 1.000000e+00 : f32
    %86 = vector.broadcast %cst_16 : f32 to vector<8x192xf32>
    %87 = arith.addf %86, %85 : vector<8x192xf32>
    %88 = arith.divf %86, %87 : vector<8x192xf32>
    %89 = vector.extract_strided_slice %88 {offsets = [0, 0], sizes = [8, 64], strides = [1, 1]} : vector<8x192xf32> to vector<8x64xf32>
    %90 = vector.extract_strided_slice %88 {offsets = [0, 64], sizes = [8, 64], strides = [1, 1]} : vector<8x192xf32> to vector<8x64xf32>
    %91 = vector.extract_strided_slice %88 {offsets = [0, 128], sizes = [8, 64], strides = [1, 1]} : vector<8x192xf32> to vector<8x64xf32>
    %92 = vector.extract_strided_slice %82 {offsets = [0, 192], sizes = [8, 64], strides = [1, 1]} : vector<8x256xf32> to vector<8x64xf32>
    %93 = math.tanh %92 : vector<8x64xf32>
    %94 = arith.mulf %90, %75 : vector<8x64xf32>
    %95 = arith.mulf %89, %93 : vector<8x64xf32>
    %96 = arith.addf %94, %95 : vector<8x64xf32>
    %97 = math.tanh %96 : vector<8x64xf32>
    %98 = arith.mulf %91, %97 : vector<8x64xf32>
    %99 = arith.maximumf %78, %98 : vector<8x64xf32>
    %100 = vector.extract_strided_slice %19 {offsets = [24, 0], sizes = [8, 256], strides = [1, 1]} : vector<64x256xf32> to vector<8x256xf32>
    %101 = arith.truncf %98 : vector<8x64xf32> to vector<8x64xbf16>
    %cst_17 = arith.constant dense<0.000000e+00> : vector<8x256xf32>
    %102 = tpu.matmul %101, %37, %cst_17 {dimension_numbers = #tpu.dot_dimension_numbers<[1], [0], [0], [1], [0, 0, 1, 1], [], []>} : vector<8x64xbf16>, vector<64x256xbf16>, vector<8x256xf32> -> vector<8x256xf32>
    %103 = arith.addf %100, %102 : vector<8x256xf32>
    %104 = vector.extract_strided_slice %103 {offsets = [0, 0], sizes = [8, 192], strides = [1, 1]} : vector<8x256xf32> to vector<8x192xf32>
    %105 = arith.negf %104 : vector<8x192xf32>
    %106 = math.exp %105 : vector<8x192xf32>
    %cst_18 = arith.constant 1.000000e+00 : f32
    %107 = vector.broadcast %cst_18 : f32 to vector<8x192xf32>
    %108 = arith.addf %107, %106 : vector<8x192xf32>
    %109 = arith.divf %107, %108 : vector<8x192xf32>
    %110 = vector.extract_strided_slice %109 {offsets = [0, 0], sizes = [8, 64], strides = [1, 1]} : vector<8x192xf32> to vector<8x64xf32>
    %111 = vector.extract_strided_slice %109 {offsets = [0, 64], sizes = [8, 64], strides = [1, 1]} : vector<8x192xf32> to vector<8x64xf32>
    %112 = vector.extract_strided_slice %109 {offsets = [0, 128], sizes = [8, 64], strides = [1, 1]} : vector<8x192xf32> to vector<8x64xf32>
    %113 = vector.extract_strided_slice %103 {offsets = [0, 192], sizes = [8, 64], strides = [1, 1]} : vector<8x256xf32> to vector<8x64xf32>
    %114 = math.tanh %113 : vector<8x64xf32>
    %115 = arith.mulf %111, %96 : vector<8x64xf32>
    %116 = arith.mulf %110, %114 : vector<8x64xf32>
    %117 = arith.addf %115, %116 : vector<8x64xf32>
    %118 = math.tanh %117 : vector<8x64xf32>
    %119 = arith.mulf %112, %118 : vector<8x64xf32>
    %120 = arith.maximumf %99, %119 : vector<8x64xf32>
    %121 = vector.extract_strided_slice %19 {offsets = [32, 0], sizes = [8, 256], strides = [1, 1]} : vector<64x256xf32> to vector<8x256xf32>
    %122 = arith.truncf %119 : vector<8x64xf32> to vector<8x64xbf16>
    %cst_19 = arith.constant dense<0.000000e+00> : vector<8x256xf32>
    %123 = tpu.matmul %122, %37, %cst_19 {dimension_numbers = #tpu.dot_dimension_numbers<[1], [0], [0], [1], [0, 0, 1, 1], [], []>} : vector<8x64xbf16>, vector<64x256xbf16>, vector<8x256xf32> -> vector<8x256xf32>
    %124 = arith.addf %121, %123 : vector<8x256xf32>
    %125 = vector.extract_strided_slice %124 {offsets = [0, 0], sizes = [8, 192], strides = [1, 1]} : vector<8x256xf32> to vector<8x192xf32>
    %126 = arith.negf %125 : vector<8x192xf32>
    %127 = math.exp %126 : vector<8x192xf32>
    %cst_20 = arith.constant 1.000000e+00 : f32
    %128 = vector.broadcast %cst_20 : f32 to vector<8x192xf32>
    %129 = arith.addf %128, %127 : vector<8x192xf32>
    %130 = arith.divf %128, %129 : vector<8x192xf32>
    %131 = vector.extract_strided_slice %130 {offsets = [0, 0], sizes = [8, 64], strides = [1, 1]} : vector<8x192xf32> to vector<8x64xf32>
    %132 = vector.extract_strided_slice %130 {offsets = [0, 64], sizes = [8, 64], strides = [1, 1]} : vector<8x192xf32> to vector<8x64xf32>
    %133 = vector.extract_strided_slice %130 {offsets = [0, 128], sizes = [8, 64], strides = [1, 1]} : vector<8x192xf32> to vector<8x64xf32>
    %134 = vector.extract_strided_slice %124 {offsets = [0, 192], sizes = [8, 64], strides = [1, 1]} : vector<8x256xf32> to vector<8x64xf32>
    %135 = math.tanh %134 : vector<8x64xf32>
    %136 = arith.mulf %132, %117 : vector<8x64xf32>
    %137 = arith.mulf %131, %135 : vector<8x64xf32>
    %138 = arith.addf %136, %137 : vector<8x64xf32>
    %139 = math.tanh %138 : vector<8x64xf32>
    %140 = arith.mulf %133, %139 : vector<8x64xf32>
    %141 = arith.maximumf %120, %140 : vector<8x64xf32>
    %142 = vector.extract_strided_slice %19 {offsets = [40, 0], sizes = [8, 256], strides = [1, 1]} : vector<64x256xf32> to vector<8x256xf32>
    %143 = arith.truncf %140 : vector<8x64xf32> to vector<8x64xbf16>
    %cst_21 = arith.constant dense<0.000000e+00> : vector<8x256xf32>
    %144 = tpu.matmul %143, %37, %cst_21 {dimension_numbers = #tpu.dot_dimension_numbers<[1], [0], [0], [1], [0, 0, 1, 1], [], []>} : vector<8x64xbf16>, vector<64x256xbf16>, vector<8x256xf32> -> vector<8x256xf32>
    %145 = arith.addf %142, %144 : vector<8x256xf32>
    %146 = vector.extract_strided_slice %145 {offsets = [0, 0], sizes = [8, 192], strides = [1, 1]} : vector<8x256xf32> to vector<8x192xf32>
    %147 = arith.negf %146 : vector<8x192xf32>
    %148 = math.exp %147 : vector<8x192xf32>
    %cst_22 = arith.constant 1.000000e+00 : f32
    %149 = vector.broadcast %cst_22 : f32 to vector<8x192xf32>
    %150 = arith.addf %149, %148 : vector<8x192xf32>
    %151 = arith.divf %149, %150 : vector<8x192xf32>
    %152 = vector.extract_strided_slice %151 {offsets = [0, 0], sizes = [8, 64], strides = [1, 1]} : vector<8x192xf32> to vector<8x64xf32>
    %153 = vector.extract_strided_slice %151 {offsets = [0, 64], sizes = [8, 64], strides = [1, 1]} : vector<8x192xf32> to vector<8x64xf32>
    %154 = vector.extract_strided_slice %151 {offsets = [0, 128], sizes = [8, 64], strides = [1, 1]} : vector<8x192xf32> to vector<8x64xf32>
    %155 = vector.extract_strided_slice %145 {offsets = [0, 192], sizes = [8, 64], strides = [1, 1]} : vector<8x256xf32> to vector<8x64xf32>
    %156 = math.tanh %155 : vector<8x64xf32>
    %157 = arith.mulf %153, %138 : vector<8x64xf32>
    %158 = arith.mulf %152, %156 : vector<8x64xf32>
    %159 = arith.addf %157, %158 : vector<8x64xf32>
    %160 = math.tanh %159 : vector<8x64xf32>
    %161 = arith.mulf %154, %160 : vector<8x64xf32>
    %162 = arith.maximumf %141, %161 : vector<8x64xf32>
    %163 = vector.extract_strided_slice %19 {offsets = [48, 0], sizes = [8, 256], strides = [1, 1]} : vector<64x256xf32> to vector<8x256xf32>
    %164 = arith.truncf %161 : vector<8x64xf32> to vector<8x64xbf16>
    %cst_23 = arith.constant dense<0.000000e+00> : vector<8x256xf32>
    %165 = tpu.matmul %164, %37, %cst_23 {dimension_numbers = #tpu.dot_dimension_numbers<[1], [0], [0], [1], [0, 0, 1, 1], [], []>} : vector<8x64xbf16>, vector<64x256xbf16>, vector<8x256xf32> -> vector<8x256xf32>
    %166 = arith.addf %163, %165 : vector<8x256xf32>
    %167 = vector.extract_strided_slice %166 {offsets = [0, 0], sizes = [8, 192], strides = [1, 1]} : vector<8x256xf32> to vector<8x192xf32>
    %168 = arith.negf %167 : vector<8x192xf32>
    %169 = math.exp %168 : vector<8x192xf32>
    %cst_24 = arith.constant 1.000000e+00 : f32
    %170 = vector.broadcast %cst_24 : f32 to vector<8x192xf32>
    %171 = arith.addf %170, %169 : vector<8x192xf32>
    %172 = arith.divf %170, %171 : vector<8x192xf32>
    %173 = vector.extract_strided_slice %172 {offsets = [0, 0], sizes = [8, 64], strides = [1, 1]} : vector<8x192xf32> to vector<8x64xf32>
    %174 = vector.extract_strided_slice %172 {offsets = [0, 64], sizes = [8, 64], strides = [1, 1]} : vector<8x192xf32> to vector<8x64xf32>
    %175 = vector.extract_strided_slice %172 {offsets = [0, 128], sizes = [8, 64], strides = [1, 1]} : vector<8x192xf32> to vector<8x64xf32>
    %176 = vector.extract_strided_slice %166 {offsets = [0, 192], sizes = [8, 64], strides = [1, 1]} : vector<8x256xf32> to vector<8x64xf32>
    %177 = math.tanh %176 : vector<8x64xf32>
    %178 = arith.mulf %174, %159 : vector<8x64xf32>
    %179 = arith.mulf %173, %177 : vector<8x64xf32>
    %180 = arith.addf %178, %179 : vector<8x64xf32>
    %181 = math.tanh %180 : vector<8x64xf32>
    %182 = arith.mulf %175, %181 : vector<8x64xf32>
    %183 = arith.maximumf %162, %182 : vector<8x64xf32>
    %184 = vector.extract_strided_slice %19 {offsets = [56, 0], sizes = [8, 256], strides = [1, 1]} : vector<64x256xf32> to vector<8x256xf32>
    %185 = arith.truncf %182 : vector<8x64xf32> to vector<8x64xbf16>
    %cst_25 = arith.constant dense<0.000000e+00> : vector<8x256xf32>
    %186 = tpu.matmul %185, %37, %cst_25 {dimension_numbers = #tpu.dot_dimension_numbers<[1], [0], [0], [1], [0, 0, 1, 1], [], []>} : vector<8x64xbf16>, vector<64x256xbf16>, vector<8x256xf32> -> vector<8x256xf32>
    %187 = arith.addf %184, %186 : vector<8x256xf32>
    %188 = vector.extract_strided_slice %187 {offsets = [0, 0], sizes = [8, 192], strides = [1, 1]} : vector<8x256xf32> to vector<8x192xf32>
    %189 = arith.negf %188 : vector<8x192xf32>
    %190 = math.exp %189 : vector<8x192xf32>
    %cst_26 = arith.constant 1.000000e+00 : f32
    %191 = vector.broadcast %cst_26 : f32 to vector<8x192xf32>
    %192 = arith.addf %191, %190 : vector<8x192xf32>
    %193 = arith.divf %191, %192 : vector<8x192xf32>
    %194 = vector.extract_strided_slice %193 {offsets = [0, 0], sizes = [8, 64], strides = [1, 1]} : vector<8x192xf32> to vector<8x64xf32>
    %195 = vector.extract_strided_slice %193 {offsets = [0, 64], sizes = [8, 64], strides = [1, 1]} : vector<8x192xf32> to vector<8x64xf32>
    %196 = vector.extract_strided_slice %193 {offsets = [0, 128], sizes = [8, 64], strides = [1, 1]} : vector<8x192xf32> to vector<8x64xf32>
    %197 = vector.extract_strided_slice %187 {offsets = [0, 192], sizes = [8, 64], strides = [1, 1]} : vector<8x256xf32> to vector<8x64xf32>
    %198 = math.tanh %197 : vector<8x64xf32>
    %199 = arith.mulf %195, %180 : vector<8x64xf32>
    %200 = arith.mulf %194, %198 : vector<8x64xf32>
    %201 = arith.addf %199, %200 : vector<8x64xf32>
    %202 = math.tanh %201 : vector<8x64xf32>
    %203 = arith.mulf %196, %202 : vector<8x64xf32>
    %204 = arith.maximumf %183, %203 : vector<8x64xf32>
    %c0_27 = arith.constant 0 : index
    %c0_28 = arith.constant 0 : index
    %205 = vector.load %arg5[%c0_27, %c0_28] : memref<300x128xbf16, #tpu.memory_space<vmem>>, vector<300x128xbf16>
    %cst_29 = arith.constant dense<0.000000e+00> : vector<8x128xf32>
    %206 = tpu.matmul %36, %205, %cst_29 {dimension_numbers = #tpu.dot_dimension_numbers<[1], [0], [0], [1], [0, 0, 1, 1], [], []>} : vector<8x300xbf16>, vector<300x128xbf16>, vector<8x128xf32> -> vector<8x128xf32>
    %207 = arith.truncf %204 : vector<8x64xf32> to vector<8x64xbf16>
    %c0_30 = arith.constant 0 : index
    %c0_31 = arith.constant 0 : index
    %208 = vector.load %arg6[%c0_30, %c0_31] : memref<64x128xbf16, #tpu.memory_space<vmem>>, vector<64x128xbf16>
    %cst_32 = arith.constant dense<0.000000e+00> : vector<8x128xf32>
    %209 = tpu.matmul %207, %208, %cst_32 {dimension_numbers = #tpu.dot_dimension_numbers<[1], [0], [0], [1], [0, 0, 1, 1], [], []>} : vector<8x64xbf16>, vector<64x128xbf16>, vector<8x128xf32> -> vector<8x128xf32>
    %210 = arith.addf %206, %209 : vector<8x128xf32>
    %c0_33 = arith.constant 0 : index
    %c0_34 = arith.constant 0 : index
    %211 = vector.load %arg7[%c0_33, %c0_34] : memref<1x128xf32, #tpu.memory_space<vmem>>, vector<1x128xf32>
    %212 = vector.broadcast %211 : vector<1x128xf32> to vector<8x128xf32>
    %213 = arith.addf %210, %212 : vector<8x128xf32>
    %c0_35 = arith.constant 0 : index
    %c0_36 = arith.constant 0 : index
    %214 = vector.load %arg8[%c0_35, %c0_36] : memref<8x128xf32, #tpu.memory_space<vmem>>, vector<8x128xf32>
    tpu.vector_store %arg8[%c0_35, %c0_36], %213 {strides = array<i32>} : memref<8x128xf32, #tpu.memory_space<vmem>>, vector<8x128xf32>,
    return
  }
}

</mosaic_0001>

<bundles_post_ra>
// kernel: tpu_custom_call.1
= control target key start
LH: loop header
LB: loop body
LE: loop exit
PB: predicated region body
PF: predicated region fallthrough
CT: control target
= control target key end

     0   :  { %13 = vsyncpa [#allocation3], 0  ;;  %s2632_s0 = inlined_call_operand.hbm [shape: bf16[64,300], index: 0, kind: input, shape index: {}]   ;;  %s2633_s1 = inlined_call_operand.hbm [shape: bf16[300,256], index: 1, kind: input, shape index: {}]   ;;  %s2634_s2 = inlined_call_operand.hbm [shape: bf16[64,256], index: 2, kind: input, shape index: {}]   ;;  %s2635_s3 = inlined_call_operand.vmem [shape: f32[1,256], index: 3, kind: input, shape index: {}]   ;;  %s2636_s4 = inlined_call_operand.vmem [shape: f32[1,256], index: 4, kind: input, shape index: {}]   ;;  %s2637_s5 = inlined_call_operand.hbm [shape: bf16[300,128], index: 5, kind: input, shape index: {}]   ;;  %s2638_s6 = inlined_call_operand.hbm [shape: bf16[64,128], index: 6, kind: input, shape index: {}]   ;;  %s2639_s7 = inlined_call_operand.vmem [shape: f32[1,128], index: 7, kind: input, shape index: {}]   ;;  %s2640_s8 = inlined_call_operand.hbm [shape: f32[8,128], index: 8, kind: output, shape index: {}]  }
   0x1   :  { %14 = vsyncpa [#allocation6], 0 }
   0x2   :  { %15 = vsyncpa [#allocation9], 0 }
   0x3   :  { %16 = vsyncpa [#allocation4], 0  ;;  %s2185_s27 = smov [#allocation5]   ;;  %s2045_s9 = scalar_lea.hbm %s2633_s1, 4864 }
   0x4   :  { %s34_s28 = sshll.u32 %s2185_s27, 4  ;;  %p2046_p0 = scmp.ne.s32.totalorder %s2633_s1, %s2045_s9  ;;  %s35_s28 = int_to_ptr.vmem [resolvable:$true] %s34_s28 }
   0x5   :  { %p2049_p1 = scmp.lt.u32.totalorder %s2045_s9, %s2633_s1 }
   0x7   :  { %p2051_p2 = pnand %p2049_p1, %p2046_p0 }
   0x9   :  { %2054 = shalt.err (!%p2051_p2)
}
   0xa   :  { %s2055_s14 = scalar_lea.vmem %s35_s28, 4864  ;;  %p2060_p4 = scmp.lt.s32.totalorder %s35_s28, %s35_s28 }
   0xb   :  { %p2056_p3 = scmp.ne.s32.totalorder %s35_s28, %s2055_s14  ;;  %p2061_p5 = scmp.lt.s32.totalorder %s2055_s14, %s2055_s14 }
   0xd   :  { %p2062_p6 = por %p2061_p5, %p2060_p4 }
   0xf   :  { %p2063_p7 = pnand %p2062_p6, %p2056_p3 }
  0x11   :  { %2066 = shalt.err (!%p2063_p7)
}
  0x12   :  { %s2186_s15 = smov 128   ;;  %s2187_s16 = smov 8  }
  0x13   :  { %40 = dma.hbm_to_vmem [thread:$0]  %s2633_s1, 4864, %s35_s28, [#allocation6], %s2186_s15, %s2186_s15, %s2187_s16  }
  0x14   :  { %s2188_s19 = smov [#allocation8]   ;;  %s2067_s23 = scalar_lea.hbm %s2637_s5, 2432 }
  0x15   :  { %s62_s20 = sshll.u32 %s2188_s19, 4  ;;  %p2068_p8 = scmp.ne.s32.totalorder %s2637_s5, %s2067_s23  ;;  %s63_s20 = int_to_ptr.vmem [resolvable:$true] %s62_s20 }
  0x16   :  { %p2071_p9 = scmp.lt.u32.totalorder %s2067_s23, %s2637_s5 }
  0x18   :  { %p2073_p10 = pnand %p2071_p9, %p2068_p8 }
  0x1a   :  { %2076 = shalt.err (!%p2073_p10)
}
  0x1b   :  { %s2077_s29 = scalar_lea.vmem %s63_s20, 2432  ;;  %p2082_p12 = scmp.lt.s32.totalorder %s63_s20, %s63_s20 }
  0x1c   :  { %p2078_p11 = scmp.ne.s32.totalorder %s63_s20, %s2077_s29  ;;  %p2083_p13 = scmp.lt.s32.totalorder %s2077_s29, %s2077_s29 }
  0x1e   :  { %p2084_p0 = por %p2083_p13, %p2082_p12 }
  0x20   :  { %p2085_p1 = pnand %p2084_p0, %p2078_p11 }
  0x22   :  { %2088 = shalt.err (!%p2085_p1)
}
  0x23   :  { %s2189_s1 = smov 64   ;;  %s2190_s28 = smov 4  }
  0x24   :  { %68 = dma.hbm_to_vmem [thread:$0]  %s2637_s5, 2432, %s63_s20, [#allocation9], %s2189_s1, %s2189_s1, %s2190_s28  }
  0x25   :  { %s2191_s10 = smov [#allocation2]   ;;  %s2089_s14 = scalar_lea.hbm %s2632_s0, 1536 }
  0x26   :  { %s22_s11 = sshll.u32 %s2191_s10, 4  ;;  %p2090_p2 = scmp.ne.s32.totalorder %s2632_s0, %s2089_s14  ;;  %s23_s11 = int_to_ptr.vmem [resolvable:$true] %s22_s11 }
  0x27   :  { %p2093_p3 = scmp.lt.u32.totalorder %s2089_s14, %s2632_s0 }
  0x29   :  { %p2095_p4 = pnand %p2093_p3, %p2090_p2 }
  0x2b   :  { %2098 = shalt.err (!%p2095_p4)
}
  0x2c   :  { %s2099_s22 = scalar_lea.vmem %s23_s11, 1536  ;;  %p2104_p6 = scmp.lt.s32.totalorder %s23_s11, %s23_s11 }
  0x2d   :  { %p2100_p5 = scmp.ne.s32.totalorder %s23_s11, %s2099_s22  ;;  %p2105_p7 = scmp.lt.s32.totalorder %s2099_s22, %s2099_s22 }
  0x2f   :  { %p2106_p8 = por %p2105_p7, %p2104_p6 }
  0x31   :  { %p2107_p9 = pnand %p2106_p8, %p2100_p5 }
  0x33   :  { %2110 = shalt.err (!%p2107_p9)
}
  0x34   :  { %s2192_s5 = smov 192   ;;  %s2193_s20 = smov 12  }
  0x35   :  { %28 = dma.hbm_to_vmem [thread:$0]  %s2632_s0, 1536, %s23_s11, [#allocation3], %s2192_s5, %s2192_s5, %s2193_s20  }
  0x36   :  { %s2194_s25 = smov [#allocation7]   ;;  %s2195_s27 = smov [#allocation10]  }
  0x37   :  { %s46_s26 = sshll.u32 %s2194_s25, 4  ;;  %s74_s29 = sshll.u32 %s2195_s27, 4  ;;  %s47_s26 = int_to_ptr.vmem [resolvable:$true] %s46_s26  ;;  %s75_s29 = int_to_ptr.vmem [resolvable:$true] %s74_s29 }
  0x38   :  { %s2111_s10 = scalar_lea.hbm %s2634_s2, 1024 }
  0x39   :  { %p2112_p10 = scmp.ne.s32.totalorder %s2634_s2, %s2111_s10  ;;  %p2115_p11 = scmp.lt.u32.totalorder %s2111_s10, %s2634_s2 }
  0x3b   :  { %p2117_p12 = pnand %p2115_p11, %p2112_p10 }
  0x3d   :  { %2120 = shalt.err (!%p2117_p12)
}
  0x3e   :  { %s2121_s0 = scalar_lea.vmem %s47_s26, 1024  ;;  %p2126_p0 = scmp.lt.s32.totalorder %s47_s26, %s47_s26 }
  0x3f   :  { %p2122_p13 = scmp.ne.s32.totalorder %s47_s26, %s2121_s0  ;;  %p2127_p1 = scmp.lt.s32.totalorder %s2121_s0, %s2121_s0 }
  0x41   :  { %p2128_p2 = por %p2127_p1, %p2126_p0 }
  0x43   :  { %p2129_p3 = pnand %p2128_p2, %p2122_p13 }
  0x45   :  { %2132 = shalt.err (!%p2129_p3)
}
  0x46   :  { %52 = dma.hbm_to_vmem [thread:$0]  %s2634_s2, 1024, %s47_s26, [#allocation6], %s2186_s15, %s2186_s15, %s2187_s16  }
  0x47   :  { %s2133_s22 = scalar_lea.hbm %s2638_s6, 512 }
  0x48   :  { %p2134_p4 = scmp.ne.s32.totalorder %s2638_s6, %s2133_s22  ;;  %p2137_p5 = scmp.lt.u32.totalorder %s2133_s22, %s2638_s6 }
  0x4a   :  { %p2139_p6 = pnand %p2137_p5, %p2134_p4 }
  0x4c   :  { %2142 = shalt.err (!%p2139_p6)
}
  0x4d   :  { %s2143_s25 = scalar_lea.vmem %s75_s29, 512  ;;  %p2148_p8 = scmp.lt.s32.totalorder %s75_s29, %s75_s29 }
  0x4e   :  { %p2144_p7 = scmp.ne.s32.totalorder %s75_s29, %s2143_s25  ;;  %p2149_p9 = scmp.lt.s32.totalorder %s2143_s25, %s2143_s25 }
  0x50   :  { %p2150_p10 = por %p2149_p9, %p2148_p8 }
  0x52   :  { %p2151_p11 = pnand %p2150_p10, %p2144_p7 }
  0x54   :  { %2154 = shalt.err (!%p2151_p11)
}
  0x55   :  { %80 = dma.hbm_to_vmem [thread:$0]  %s2638_s6, 512, %s75_s29, [#allocation9], %s2189_s1, %s2189_s1, %s2190_s28  }
  0x56   :  { %2177 = dma.done.wait [#allocation3], 1536  }
  0x57   :  { %2178 = vsyncadd [#allocation3], 4294965760 }
  0x58   :  { %2179 = dma.done.wait [#allocation6], 5888  }
  0x59   :  { %2180 = vsyncadd [#allocation6], 4294961408 }
  0x5a   :  { %2181 = dma.done.wait [#allocation9], 2944  }
  0x5b   :  { %2182 = vsyncadd [#allocation9], 4294964352  ;;  %v2196_v0 = vmov 0   ;;  %v1845_v1 = vld [vmem:[#allocation5 + $0x4] ss:$8 sps:$4 sm:$0xff]   ;;  %v2326_v19 = vld [vmem:[#allocation2 + $0x18] sm:$0xff] }
  0x5c   :  { %771 = vmatprep.mubr.bf16.mxu1 %v2196_v0  ;;  %v1847_v2 = vld [vmem:[#allocation5] ss:$8 sps:$4 sm:$0xff]   ;;  %433 = vmatprep.subr.bf16.mxu0 %v1845_v1  ;;  %v1848_v3 = vld [vmem:[#allocation5 + $0x14] ss:$8 sps:$4 sm:$0xff]   ;;  %v1850_v4 = vld [vmem:[#allocation5 + $0x10] ss:$8 sps:$4 sm:$0xff]  }
  0x5d   :  { %434 = vmatpush1.bf16.msra.mxu0 %v1847_v2  ;;  %v1851_v5 = vld [vmem:[#allocation5 + $0x24] ss:$8 sps:$4 sm:$0xff]   ;;  %v1853_v6 = vld [vmem:[#allocation5 + $0x20] ss:$8 sps:$4 sm:$0xff]   ;;  %v1854_v7 = vld [vmem:[#allocation5 + $0x34] ss:$8 sps:$4 sm:$0xff]  }
  0x5e   :  { %435 = vmatprep.subr.bf16.mxu0 %v1848_v3  ;;  %v1856_v8 = vld [vmem:[#allocation5 + $0x30] ss:$8 sps:$4 sm:$0xff]   ;;  %v1857_v9 = vld [vmem:[#allocation5 + $0x44] ss:$8 sps:$4 sm:$0xff]   ;;  %v1859_v10 = vld [vmem:[#allocation5 + $0x40] ss:$8 sps:$4 sm:$0xff]  }
  0x5f   :  { %v1860_v11 = vld [vmem:[#allocation5 + $0x54] ss:$8 sps:$4 sm:$0xff]   ;;  %v1862_v12 = vld [vmem:[#allocation5 + $0x50] ss:$8 sps:$4 sm:$0xff]   ;;  %v1863_v13 = vld [vmem:[#allocation5 + $0x64] ss:$8 sps:$4 sm:$0xff]  }
  0x60   :  { %v2318_v14 = vld [vmem:[#allocation2] sm:$0xff]  ;;  %v2320_v15 = vld [vmem:[#allocation2 + $0xc] sm:$0xff]  ;;  %v1866_v20 = vld [vmem:[#allocation5 + $0x74] ss:$8 sps:$4 sm:$0xff]   ;;  %vm426_vm0 = vcmask 1045504   ;;  %vm413_vm1 = vcmask 359424  }
  0x61   :  { %436 = vmatpush1.bf16.msra.mxu0 %v1850_v4  ;;  %v1631_v16 = vcombine.high %v2318_v14, %v2320_v15  ;;  %v639_v17 = vmax.bf16 %v2320_v15, %v2318_v14  ;;  %v1865_v18 = vld [vmem:[#allocation5 + $0x60] ss:$8 sps:$4 sm:$0xff]   ;;  %v1868_v24 = vld [vmem:[#allocation5 + $0x70] ss:$8 sps:$4 sm:$0xff]   ;;  %v1869_v26 = vld [vmem:[#allocation5 + $0x84] ss:$8 sps:$4 sm:$0xff]   ;;  %v1630_v63 = vcombine.low %v2318_v14, %v2320_v15 }
  0x62   :  { %437 = vmatprep.subr.bf16.mxu0 %v1851_v5  ;;  %v2329_v22 = vld [vmem:[#allocation2 + $0x24] sm:$0xff]  ;;  %v2332_v25 = vld [vmem:[#allocation2 + $0x30] sm:$0xff]  ;;  %v2339_v31 = vld [vmem:[#allocation2 + $0x3c] sm:$0xff]  ;;  %vm735_vm2 = vcmask 523264   ;;  %vm2198_vm3 = vmmov 0   ;;  %s2199_s26 = smov [#allocation11]  }
  0x63   :  { %465 = vmatprep.mubr.bf16.mxu0 %v1631_v16  ;;  %v641_v21 = vmax.bf16 %v639_v17, %v2326_v19  ;;  %v2335_v28 = vld [vmem:[#allocation2 + $0x8] sm:$0xf]  ;;  %v2337_v29 = vld [vmem:[#allocation2 + $0x14] sm:$0xf]  ;;  %v2346_v36 = vld [vmem:[#allocation2 + $0x20] sm:$0xf]  ;;  %v1634_v2 = vcombine.high %v2326_v19, %v2329_v22 }
  0x64   :  { %v1871_v30 = vld [vmem:[#allocation5 + $0x80] ss:$8 sps:$4 sm:$0xff]   ;;  %v640_v32 = vmax.bf16 %v2337_v29, %v2335_v28  ;;  %v1872_v33 = vld [vmem:[#allocation5 + $0x94] ss:$8 sps:$4 sm:$0xff]   ;;  %v2348_v37 = vld [vmem:[#allocation2 + $0x2c] sm:$0xf]  ;;  %v1632_v14 = vcombine.low %v2335_v28, %v2337_v29 }
  0x65   :  { %438 = vmatpush1.bf16.msra.mxu0 %v1853_v6  ;;  %v643_v23 = vmax.bf16 %v641_v21, %v2329_v22  ;;  %v2344_v35 = vld [vmem:[#allocation2 + $0x48] sm:$0xff]  ;;  %v2354_v40 = vld [vmem:[#allocation2 + $0x38] sm:$0xf]  ;;  %v2357_v44 = vld [vmem:[#allocation2 + $0x44] sm:$0xf]  ;;  %v1635_v15 = vcombine.low %v2346_v36, %v2348_v37  ;;  %s1619_s27 = sshll.u32 %s2199_s26, 4  ;;  %s1620_s27 = int_to_ptr.vmem [resolvable:$true] %s1619_s27 }
  0x66   :  { %439 = vmatprep.subr.bf16.mxu0 %v1854_v7  ;;  %v642_v38 = vmax.bf16 %v640_v32, %v2346_v36  ;;  %v1874_v41 = vld [vmem:[#allocation5 + $0x90] ss:$8 sps:$4 sm:$0xff]   ;;  %v1875_v43 = vld [vmem:[#allocation5 + $0xa4] ss:$8 sps:$4 sm:$0xff]   ;;  %v1877_v47 = vld [vmem:[#allocation5 + $0xa0] ss:$8 sps:$4 sm:$0xff]   ;;  %v1633_v7 = vcombine.low %v2326_v19, %v2329_v22  ;;  %v1638_v16 = vcombine.low %v2354_v40, %v2357_v44  ;;  %p2160_p13 = scmp.lt.s32.totalorder %s1620_s27, %s1620_s27 }
  0x67   :  { %v645_v27 = vmax.bf16 %v643_v23, %v2332_v25  ;;  %v2360_v46 = vld [vmem:[#allocation2 + $0x50] sm:$0xf]  ;;  %v1878_v49 = vld [vmem:[#allocation5 + $0xb4] ss:$8 sps:$4 sm:$0xff]   ;;  %v1881_v54 = vld [vmem:[#allocation5 + $0xc4] ss:$8 sps:$4 sm:$0xff]  }
  0x68   :  { %v644_v42 = vmax.bf16 %v642_v38, %v2348_v37  ;;  %v2363_v50 = vld [vmem:[#allocation2 + $0x5c] sm:$0xf]  ;;  %v1880_v52 = vld [vmem:[#allocation5 + $0xb0] ss:$8 sps:$4 sm:$0xff]   ;;  %v1883_v55 = vld [vmem:[#allocation5 + $0xc0] ss:$8 sps:$4 sm:$0xff]  }
  0x69   :  { %440 = vmatpush1.bf16.msra.mxu0 %v1856_v8  ;;  %v647_v34 = vmax.bf16 %v645_v27, %v2339_v31  ;;  %v1884_v56 = vld [vmem:[#allocation5 + $0xd4] ss:$8 sps:$4 sm:$0xff]   ;;  %v1886_v57 = vld [vmem:[#allocation5 + $0xd0] ss:$8 sps:$4 sm:$0xff]   ;;  %v1887_v58 = vld [vmem:[#allocation5 + $0xe4] ss:$8 sps:$4 sm:$0xff]   ;;  %v1637_v8 = vcombine.high %v2332_v25, %v2339_v31  ;;  %v1641_v17 = vcombine.low %v2360_v46, %v2363_v50 }
  0x6a   :  { %441 = vmatprep.subr.bf16.mxu0 %v1857_v9  ;;  %v646_v45 = vmax.bf16 %v644_v42, %v2354_v40  ;;  %v1889_v59 = vld [vmem:[#allocation5 + $0xe0] ss:$8 sps:$4 sm:$0xff]   ;;  %v1890_v60 = vld [vmem:[#allocation5 + $0xf4] ss:$8 sps:$4 sm:$0xff]   ;;  %v1892_v61 = vld [vmem:[#allocation5 + $0xf0] ss:$8 sps:$4 sm:$0xff]  }
  0x6b   :  { %v2352_v39 = vmax.bf16 %v647_v34, %v2344_v35  ;;  %v1897_v62 = vld [vmem:[#allocation5 + $0x104] ss:$8 sps:$4 sm:$0xff]   ;;  %v1895_v1 = vld [vmem:[#allocation5 + $0x100] ss:$8 sps:$4 sm:$0xff]   ;;  %v1902_v3 = vld [vmem:[#allocation5 + $0x114] ss:$8 sps:$4 sm:$0xff]  }
  0x6c   :  { %v648_v48 = vmax.bf16 %v646_v45, %v2357_v44  ;;  %v1900_v4 = vld [vmem:[#allocation5 + $0x110] ss:$8 sps:$4 sm:$0xff]   ;;  %v1905_v5 = vld [vmem:[#allocation5 + $0x124] ss:$8 sps:$4 sm:$0x3f]   ;;  %s2155_s29 = scalar_lea.vmem %s1620_s27, 128 }
  0x6d   :  { %442 = vmatpush1.bf16.msra.mxu0 %v1859_v10  ;;  %v1908_v6 = vld [vmem:[#allocation5 + $0x120] ss:$8 sps:$4 sm:$0x3f]   ;;  %v2380_v10 = vld [vmem:[#allocation2 + $0x54] sm:$0xff]  ;;  %p2156_p12 = scmp.ne.s32.totalorder %s1620_s27, %s2155_s29  ;;  %p2161_p0 = scmp.lt.s32.totalorder %s2155_s29, %s2155_s29 }
  0x6e   :  { %443 = vmatprep.subr.bf16.mxu0 %v1860_v11  ;;  %v2366_v51 = vmax.bf16 %v648_v48, %v2360_v46  ;;  %v428_v9 = vsel %vm426_vm0, %v1908_v6, 0  ;;  %v1636_v11 = vcombine.low %v2332_v25, %v2339_v31  ;;  %v153_v21 = vld [vmem:[%s2635_s3] sm:$0x3] }
  0x6f   :  { %v579_v40 = vld [vmem:[%s2636_s4] sm:$0x3]  ;;  %p2162_p1 = por %p2161_p0, %p2160_p13 }
  0x70   :  { %v652_v53 = vmax.bf16 %v2366_v51, %v2363_v50 }
  0x71   :  { %444 = vmatpush1.bf16.msra.mxu0 %v1862_v12  ;;  %v1640_v12 = vcombine.high %v2344_v35, %v2380_v10  ;;  %p2163_p2 = pnand %p2162_p1, %p2156_p12 }
  0x72   :  { %445 = vmatprep.subr.bf16.mxu0 %v1863_v13  ;;  %v1639_v13 = vcombine.low %v2344_v35, %v2380_v10 }
  0x75   :  { %446 = vmatpush1.bf16.msra.mxu0 %v1865_v18  ;;  %v155_v18 = vlaneseq }
  0x76   :  { %447 = vmatprep.subr.bf16.mxu0 %v1866_v20 }
  0x77   :  { %v156_v19 = vshrl.u32 %v155_v18, 7 }
  0x79   :  { %448 = vmatpush1.bf16.msra.mxu0 %v1868_v24  ;;  %v157_v20 = vsub.s32 0, %v156_v19  ;;  %v161_v22 = vsub.s32 1, %v156_v19 }
  0x7a   :  { %449 = vmatprep.subr.bf16.mxu0 %v1869_v26 }
  0x7b   :  { %v158_v24 = vrot.slane %v153_v21, %v157_v20  ;;  %v162_v26 = vrot.slane %v153_v21, %v161_v22  ;;  %v600_v42 = vrot.slane %v579_v40, %v157_v20  ;;  %v604_v45 = vrot.slane %v579_v40, %v161_v22 }
  0x7d   :  { %450 = vmatpush1.bf16.msra.mxu0 %v1871_v30 }
  0x7e   :  { %451 = vmatprep.subr.bf16.mxu0 %v1872_v33 }
  0x81   :  { %452 = vmatpush1.bf16.msra.mxu0 %v1874_v41 }
  0x82   :  { %453 = vmatprep.subr.bf16.mxu0 %v1875_v43 }
  0x85   :  { %454 = vmatpush1.bf16.msra.mxu0 %v1877_v47 }
  0x86   :  { %455 = vmatprep.subr.bf16.mxu0 %v1878_v49 }
  0x89   :  { %456 = vmatpush1.bf16.msra.mxu0 %v1880_v52 }
  0x8a   :  { %457 = vmatprep.subr.bf16.mxu0 %v1881_v54 }
  0x8d   :  { %458 = vmatpush1.bf16.msra.mxu0 %v1883_v55 }
  0x8e   :  { %459 = vmatprep.subr.bf16.mxu0 %v1884_v56 }
  0x91   :  { %460 = vmatpush1.bf16.msra.mxu0 %v1886_v57 }
  0x92   :  { %461 = vmatprep.subr.bf16.mxu0 %v1887_v58 }
  0x95   :  { %462 = vmatpush1.bf16.msra.mxu0 %v1889_v59 }
  0x96   :  { %463 = vmatprep.subr.bf16.mxu0 %v1890_v60 }
  0x99   :  { %464 = vmatpush1.bf16.msra.mxu0 %v1892_v61 }
  0x9a   :  { %506 = vmatprep.subr.bf16.mxu0 %v1897_v62 }
  0x9c   :  { %466 = vmatmul.mubr.bf16.vlgmr.msra.gmra.mrb[0].mxu0 %v1630_v63 }
  0x9d   :  { %507 = vmatpush1.bf16.msra.mxu0 %v1895_v1  ;;  %475 = vmatprep.mubr.bf16.mxu0 %v1634_v2 }
  0x9e   :  { %508 = vmatprep.subr.bf16.mxu0 %v1902_v3 }
  0xa1   :  { %509 = vmatpush1.bf16.msra.mxu0 %v1900_v4 }
  0xa2   :  { %1680 = vmatprep.subr.msk.bf16.mxu0 %vm426_vm0, %v1905_v5 }
  0xa4   :  { %476 = vmatmul.mubr.bf16.gmra.mrb[4].mxu0 %v1633_v7 }
  0xa5   :  { %485 = vmatprep.mubr.bf16.mxu0 %v1637_v8  ;;  %511 = vmatpush1.bf16.msra.mxu0 %v428_v9 }
  0xac   :  { %486 = vmatmul.mubr.bf16.gmra.mrb[8].mxu0 %v1636_v11 }
  0xad   :  { %495 = vmatprep.mubr.bf16.mxu0 %v1640_v12 }
  0xb4   :  { %496 = vmatmul.mubr.bf16.gmra.mrb[12].mxu0 %v1639_v13 }
  0xb5   :  { %538 = vmatprep.mubr.bf16.mxu0 %v2196_v0 }
  0xbc   :  { %1681 = vmatmul.mubr.msk.bf16.vlgmr.msra.gmra.mrb[0].mxu0 %vm413_vm1, %v1632_v14 }
  0xbd   :  { %548 = vmatprep.mubr.bf16.mxu0 %v2196_v0 }
  0xc4   :  { %1682 = vmatmul.mubr.msk.bf16.gmra.mrb[4].mxu0 %vm413_vm1, %v1635_v15 }
  0xc5   :  { %558 = vmatprep.mubr.bf16.mxu0 %v2196_v0 }
  0xcc   :  { %1683 = vmatmul.mubr.msk.bf16.gmra.mrb[8].mxu0 %vm413_vm1, %v1638_v16 }
  0xcd   :  { %568 = vmatprep.mubr.bf16.mxu0 %v2196_v0 }
  0xd4   :  { %1684 = vmatmul.mubr.msk.bf16.gmra.mrb[12].mxu0 %vm413_vm1, %v1641_v17 }
 0x18f   :  { %v540_v23 = vpop.f32.mrb[0].mxu0 }
 0x190   :  { %v542_v25 = vpop.f32.mrb[1].mxu0  ;;  %v1798_v21 = vadd.f32 %v540_v23, %v158_v24 }
 0x191   :  { %v544_v27 = vpop.f32.mrb[2].mxu0 }
 0x192   :  { %v2407_v28 = vadd.f32 %v544_v27, %v158_v24  ;;  %v546_v29 = vpop.f32.mrb[3].mxu0 }
 0x193   :  { %v2409_v30 = vadd.f32 %v546_v29, %v162_v26 }
 0x197   :  { %v550_v31 = vpop.f32.mrb[4].mxu0 }
 0x198   :  { %v1802_v32 = vadd.f32 %v550_v31, %v158_v24  ;;  %v552_v33 = vpop.f32.mrb[5].mxu0 }
 0x199   :  { %v1803_v34 = vadd.f32 %v552_v33, %v162_v26  ;;  %v554_v35 = vpop.f32.mrb[6].mxu0  ;;  %v1799_v33 = vadd.f32 %v542_v25, %v162_v26 }
 0x19a   :  { %v1804_v36 = vadd.f32 %v554_v35, %v158_v24  ;;  %v556_v37 = vpop.f32.mrb[7].mxu0 }
 0x19b   :  { %v1805_v38 = vadd.f32 %v556_v37, %v162_v26 }
 0x19f   :  { %v560_v41 = vpop.f32.mrb[8].mxu0 }
 0x1a0   :  { %v1806_v43 = vadd.f32 %v560_v41, %v158_v24  ;;  %v562_v44 = vpop.f32.mrb[9].mxu0 }
 0x1a1   :  { %v1807_v46 = vadd.f32 %v562_v44, %v162_v26  ;;  %v564_v47 = vpop.f32.mrb[10].mxu0 }
 0x1a2   :  { %v586_v48 = vsub.f32 %v1804_v36, %v1806_v43  ;;  %v588_v49 = vsub.f32 %v1806_v43, %v1804_v36  ;;  %v1808_v52 = vadd.f32 %v564_v47, %v158_v24  ;;  %v566_v54 = vpop.f32.mrb[11].mxu0 }
 0x1a3   :  { %v587_v55 = vsub.f32 %v1805_v38, %v1807_v46  ;;  %v589_v56 = vsub.f32 %v1807_v46, %v1805_v38  ;;  %v1809_v57 = vadd.f32 %v566_v54, %v162_v26 }
 0x1a4   :  { %v584_v58 = vsub.f32 %v1802_v32, %v1808_v52  ;;  %v590_v59 = vsub.f32 %v1808_v52, %v1802_v32  ;;  %v613_v60 = vmul.f32 %v600_v42, %v586_v48  ;;  %v615_v61 = vmul.f32 %v600_v42, %v588_v49 }
 0x1a5   :  { %v585_v62 = vsub.f32 %v1803_v34, %v1809_v57  ;;  %v591_v63 = vsub.f32 %v1809_v57, %v1803_v34  ;;  %v614_v1 = vmul.f32 %v604_v45, %v587_v55  ;;  %v616_v2 = vmul.f32 %v604_v45, %v589_v56 }
 0x1a6   :  { %v611_v3 = vmul.f32 %v600_v42, %v584_v58  ;;  %v2414_v4 = vadd.f32 %v1806_v43, %v613_v60  ;;  %v2416_v5 = vadd.f32 %v1804_v36, %v615_v61  ;;  %v617_v6 = vmul.f32 %v600_v42, %v590_v59 }
 0x1a7   :  { %v570_v7 = vpop.f32.mrb[12].mxu0  ;;  %v612_v8 = vmul.f32 %v604_v45, %v585_v62  ;;  %v2418_v9 = vadd.f32 %v1807_v46, %v614_v1  ;;  %v2420_v11 = vadd.f32 %v1805_v38, %v616_v2  ;;  %v618_v12 = vmul.f32 %v604_v45, %v591_v63  ;;  %v2452_v62 = vld [vmem:[#allocation7] ss:$8 sps:$4 sm:$0xff]   ;;  %v2454_v63 = vld [vmem:[#allocation7 + $0x14] ss:$8 sps:$4 sm:$0xff]  }
 0x1a8   :  { %v1810_v13 = vadd.f32 %v570_v7, %v158_v24  ;;  %v572_v14 = vpop.f32.mrb[13].mxu0  ;;  %v2422_v15 = vadd.f32 %v1808_v52, %v611_v3  ;;  %v2424_v16 = vadd.f32 %v1802_v32, %v617_v6  ;;  %v2458_v1 = vld [vmem:[#allocation7 + $0x10] ss:$8 sps:$4 sm:$0xff]   ;;  %v2461_v2 = vld [vmem:[#allocation7 + $0x24] ss:$8 sps:$4 sm:$0xff]  }
 0x1a9   :  { %v1811_v17 = vadd.f32 %v572_v14, %v162_v26  ;;  %v574_v18 = vpop.f32.mrb[14].mxu0  ;;  %v2426_v19 = vadd.f32 %v1809_v57, %v612_v8  ;;  %v2428_v20 = vadd.f32 %v1803_v34, %v618_v12  ;;  %v2464_v3 = vld [vmem:[#allocation7 + $0x20] ss:$8 sps:$4 sm:$0xff]   ;;  %v2468_v7 = vld [vmem:[#allocation7 + $0x34] ss:$8 sps:$4 sm:$0xff]  }
 0x1aa   :  { %v582_v22 = vsub.f32 %v2407_v28, %v1810_v13  ;;  %v592_v27 = vsub.f32 %v1810_v13, %v2407_v28  ;;  %v1812_v29 = vadd.f32 %v574_v18, %v158_v24  ;;  %v576_v31 = vpop.f32.mrb[15].mxu0  ;;  %v2470_v12 = vld [vmem:[#allocation7 + $0x30] ss:$8 sps:$4 sm:$0xff]  }
 0x1ab   :  { %v583_v35 = vsub.f32 %v2409_v30, %v1811_v17  ;;  %v593_v36 = vsub.f32 %v1811_v17, %v2409_v30  ;;  %v1813_v32 = vadd.f32 %v576_v31, %v162_v26 }
 0x1ac   :  { %v580_v37 = vsub.f32 %v1798_v21, %v1812_v29  ;;  %v594_v38 = vsub.f32 %v1812_v29, %v1798_v21  ;;  %v609_v40 = vmul.f32 %v600_v42, %v582_v22  ;;  %v619_v41 = vmul.f32 %v600_v42, %v592_v27 }
 0x1ad   :  { %v581_v43 = vsub.f32 %v1799_v33, %v1813_v32  ;;  %v595_v34 = vsub.f32 %v1813_v32, %v1799_v33  ;;  %v610_v44 = vmul.f32 %v604_v45, %v583_v35  ;;  %v620_v23 = vmul.f32 %v604_v45, %v593_v36 }
 0x1ae   :  { %v607_v46 = vmul.f32 %v600_v42, %v580_v37  ;;  %v2434_v47 = vadd.f32 %v1810_v13, %v609_v40  ;;  %v2437_v24 = vadd.f32 %v2407_v28, %v619_v41  ;;  %v621_v25 = vmul.f32 %v600_v42, %v594_v38 }
 0x1af   :  { %v608_v48 = vmul.f32 %v604_v45, %v581_v43  ;;  %v2439_v49 = vadd.f32 %v1811_v17, %v610_v44  ;;  %v2442_v26 = vadd.f32 %v2409_v30, %v620_v23  ;;  %v622_v52 = vmul.f32 %v604_v45, %v595_v34  ;;  %v2450_v45 = vld [vmem:[#allocation7 + $0x4] ss:$8 sps:$4 sm:$0xff]  }
 0x1b0   :  { %v623_v54 = vadd.f32 %v1812_v29, %v607_v46  ;;  %v2444_v55 = vadd.f32 %v1798_v21, %v621_v25  ;;  %739 = vmatprep.subr.bf16.mxu1 %v2450_v45 }
 0x1b1   :  { %v624_v56 = vadd.f32 %v1813_v32, %v608_v48  ;;  %v2446_v57 = vadd.f32 %v1799_v33, %v622_v52  ;;  %740 = vmatpush1.bf16.msra.mxu1 %v2452_v62 }
 0x1b2   :  { %v1685_v28 = vmul.f32 -1.442695, %v623_v54  ;;  %741 = vmatprep.subr.bf16.mxu1 %v2454_v63 }
 0x1b3   :  { %1949 = vtanh.f32 %v624_v56  ;;  %v1686_v17 = vmul.f32 -1.442695, %v624_v56 }
 0x1b4   :  { %1951 = vpow2.f32 %v1685_v28 }
 0x1b5   :  { %742 = vmatpush1.bf16.msra.mxu1 %v2458_v1 }
 0x1b6   :  { %743 = vmatprep.subr.bf16.mxu1 %v2461_v2 }
 0x1b9   :  { %744 = vmatpush1.bf16.msra.mxu1 %v2464_v3 }
 0x1ba   :  { %745 = vmatprep.subr.bf16.mxu1 %v2468_v7 }
 0x1bd   :  { %v1950_v58 = vpop.eup %1949  ;;  %746 = vmatpush1.bf16.msra.mxu1 %v2470_v12 }
 0x1be   :  { %678 = vrot.lane.b32.xlu0 %v1950_v58, %s2189_s1  ;;  %v1952_v42 = vpop.eup %1951  ;;  %817 = vmatprep.subr.bf16.mxu1 %v2450_v45 }
 0x1bf   :  { %v669_v59 = vadd.f32 1.0, %v1952_v42 }
 0x1c1   :  { %1953 = vrcp.f32 %v669_v59 }
 0x1cb   :  { %v1954_v60 = vpop.eup %1953 }
 0x1cc   :  { %v676_v6 = vmul.f32 0.0, %v1954_v60 }
 0x230   :  { %v679_v61 = vpop.permute.xlu0 %678 }
 0x231   :  { %v681_v30 = vmul.f32 %v1954_v60, %v679_v61 }
 0x233   :  { %683 = vrot.lane.b32.xlu0 %v681_v30, %s2189_s1 }
 0x2a5   :  { %v684_v8 = vpop.permute.xlu0 %683 }
 0x2a6   :  { %v686_v13 = vadd.f32 %v684_v8, %v676_v6 }
 0x2a8   :  { %1955 = vtanh.f32 %v686_v13 }
 0x2a9   :  { %1957 = vpow2.f32 %v1686_v17 }
 0x2b2   :  { %v1956_v14 = vpop.eup %1955 }
 0x2b3   :  { %689 = vrot.lane.b32.xlu1 %v1956_v14, %s2189_s1  ;;  %v1958_v18 = vpop.eup %1957 }
 0x2b4   :  { %v670_v21 = vadd.f32 1.0, %v1958_v18 }
 0x2b6   :  { %1959 = vrcp.f32 %v670_v21 }
 0x2c0   :  { %v1960_v22 = vpop.eup %1959 }
 0x325   :  { %v690_v27 = vpop.permute.xlu1 %689 }
 0x326   :  { %v692_v29 = vmul.f32 %v1960_v22, %v690_v27 }
 0x328   :  { %v694_v31 = vpack.c.bf16 %v692_v29, %v692_v29  ;;  %v693_v42 = vmax.f32 %v692_v29, 0.0 }
 0x32a   :  { %1695 = vmatmul.mubr.msk.bf16.vlgmr.msra.gmra.mrb[0].mxu1 %vm735_vm2, %v694_v31 }
 0x32b   :  { %818 = vmatpush1.bf16.msra.mxu1 %v2452_v62  ;;  %849 = vmatprep.mubr.bf16.mxu1 %v2196_v0 }
 0x32c   :  { %819 = vmatprep.subr.bf16.mxu1 %v2454_v63 }
 0x32f   :  { %820 = vmatpush1.bf16.msra.mxu1 %v2458_v1 }
 0x330   :  { %821 = vmatprep.subr.bf16.mxu1 %v2461_v2 }
 0x333   :  { %822 = vmatpush1.bf16.msra.mxu1 %v2464_v3 }
 0x334   :  { %823 = vmatprep.subr.bf16.mxu1 %v2468_v7 }
 0x337   :  { %824 = vmatpush1.bf16.msra.mxu1 %v2470_v12 }
 0x338   :  { %895 = vmatprep.subr.bf16.mxu1 %v2450_v45 }
 0x3fd   :  { %v773_v33 = vpop.f32.mrb[0].mxu1 }
 0x3fe   :  { %v780_v35 = vadd.f32 %v773_v33, %v2434_v47  ;;  %v775_v36 = vpop.f32.mrb[1].mxu1 }
 0x3ff   :  { %v781_v32 = vadd.f32 %v775_v36, %v2439_v49  ;;  %v777_v37 = vpop.f32.mrb[2].mxu1 }
 0x400   :  { %v778_v38 = vpop.f32.mrb[3].mxu1  ;;  %v1696_v41 = vmul.f32 -1.442695, %v780_v35 }
 0x401   :  { %1961 = vtanh.f32 %v781_v32  ;;  %v1697_v52 = vmul.f32 -1.442695, %v781_v32 }
 0x402   :  { %1963 = vpow2.f32 %v1696_v41 }
 0x40b   :  { %v1962_v40 = vpop.eup %1961 }
 0x40c   :  { %797 = vrot.lane.b32.xlu1 %v1962_v40, %s2189_s1  ;;  %v1964_v43 = vpop.eup %1963 }
 0x40d   :  { %v788_v34 = vadd.f32 1.0, %v1964_v43 }
 0x40f   :  { %1965 = vrcp.f32 %v788_v34 }
 0x419   :  { %v1966_v44 = vpop.eup %1965 }
 0x41a   :  { %v795_v47 = vmul.f32 %v1966_v44, %v686_v13 }
 0x47e   :  { %v798_v23 = vpop.permute.xlu1 %797 }
 0x47f   :  { %v800_v46 = vmul.f32 %v1966_v44, %v798_v23 }
 0x481   :  { %802 = vrot.lane.b32.xlu0 %v800_v46, %s2189_s1 }
 0x4f3   :  { %v803_v25 = vpop.permute.xlu0 %802 }
 0x4f4   :  { %v805_v48 = vadd.f32 %v803_v25, %v795_v47 }
 0x4f6   :  { %1967 = vtanh.f32 %v805_v48 }
 0x4f7   :  { %1969 = vpow2.f32 %v1697_v52 }
 0x500   :  { %v1968_v49 = vpop.eup %1967 }
 0x501   :  { %808 = vrot.lane.b32.xlu1 %v1968_v49, %s2189_s1  ;;  %v1970_v54 = vpop.eup %1969 }
 0x502   :  { %v789_v56 = vadd.f32 1.0, %v1970_v54 }
 0x504   :  { %1971 = vrcp.f32 %v789_v56 }
 0x50e   :  { %v1972_v58 = vpop.eup %1971 }
 0x573   :  { %v809_v28 = vpop.permute.xlu1 %808 }
 0x574   :  { %v811_v59 = vmul.f32 %v1972_v58, %v809_v28 }
 0x576   :  { %v2491_v60 = vmax.f32 %v693_v42, %v811_v59  ;;  %v813_v61 = vpack.c.bf16 %v811_v59, %v811_v59 }
 0x578   :  { %1698 = vmatmul.mubr.msk.bf16.vlgmr.msra.gmra.mrb[4].mxu1 %vm735_vm2, %v813_v61 }
 0x579   :  { %896 = vmatpush1.bf16.msra.mxu1 %v2452_v62  ;;  %927 = vmatprep.mubr.bf16.mxu1 %v2196_v0 }
 0x57a   :  { %897 = vmatprep.subr.bf16.mxu1 %v2454_v63 }
 0x57d   :  { %898 = vmatpush1.bf16.msra.mxu1 %v2458_v1 }
 0x57e   :  { %899 = vmatprep.subr.bf16.mxu1 %v2461_v2 }
 0x581   :  { %900 = vmatpush1.bf16.msra.mxu1 %v2464_v3 }
 0x582   :  { %901 = vmatprep.subr.bf16.mxu1 %v2468_v7 }
 0x585   :  { %902 = vmatpush1.bf16.msra.mxu1 %v2470_v12 }
 0x586   :  { %973 = vmatprep.subr.bf16.mxu1 %v2450_v45 }
 0x64b   :  { %v851_v30 = vpop.f32.mrb[4].mxu1 }
 0x64c   :  { %v858_v6 = vadd.f32 %v851_v30, %v2422_v15  ;;  %v853_v8 = vpop.f32.mrb[5].mxu1 }
 0x64d   :  { %v859_v13 = vadd.f32 %v853_v8, %v2426_v19  ;;  %v855_v14 = vpop.f32.mrb[6].mxu1 }
 0x64e   :  { %v856_v17 = vpop.f32.mrb[7].mxu1  ;;  %v1699_v21 = vmul.f32 -1.442695, %v858_v6 }
 0x64f   :  { %1973 = vtanh.f32 %v859_v13  ;;  %v1700_v32 = vmul.f32 -1.442695, %v859_v13 }
 0x650   :  { %1975 = vpow2.f32 %v1699_v21 }
 0x659   :  { %v1974_v18 = vpop.eup %1973 }
 0x65a   :  { %875 = vrot.lane.b32.xlu0 %v1974_v18, %s2189_s1  ;;  %v1976_v22 = vpop.eup %1975 }
 0x65b   :  { %v866_v27 = vadd.f32 1.0, %v1976_v22 }
 0x65d   :  { %1977 = vrcp.f32 %v866_v27 }
 0x667   :  { %v1978_v29 = vpop.eup %1977 }
 0x668   :  { %v873_v15 = vmul.f32 %v1978_v29, %v805_v48 }
 0x6cc   :  { %v876_v31 = vpop.permute.xlu0 %875 }
 0x6cd   :  { %v878_v33 = vmul.f32 %v1978_v29, %v876_v31 }
 0x6cf   :  { %880 = vrot.lane.b32.xlu1 %v878_v33, %s2189_s1 }
 0x741   :  { %v881_v35 = vpop.permute.xlu1 %880 }
 0x742   :  { %v883_v36 = vadd.f32 %v881_v35, %v873_v15 }
 0x744   :  { %1979 = vtanh.f32 %v883_v36 }
 0x745   :  { %1981 = vpow2.f32 %v1700_v32 }
 0x74e   :  { %v1980_v19 = vpop.eup %1979 }
 0x74f   :  { %886 = vrot.lane.b32.xlu0 %v1980_v19, %s2189_s1  ;;  %v1982_v37 = vpop.eup %1981 }
 0x750   :  { %v867_v38 = vadd.f32 1.0, %v1982_v37 }
 0x752   :  { %1983 = vrcp.f32 %v867_v38 }
 0x75c   :  { %v1984_v40 = vpop.eup %1983 }
 0x7c1   :  { %v887_v41 = vpop.permute.xlu0 %886 }
 0x7c2   :  { %v889_v43 = vmul.f32 %v1984_v40, %v887_v41 }
 0x7c4   :  { %v890_v34 = vmax.f32 %v2491_v60, %v889_v43  ;;  %v891_v44 = vpack.c.bf16 %v889_v43, %v889_v43 }
 0x7c6   :  { %1701 = vmatmul.mubr.msk.bf16.vlgmr.msra.gmra.mrb[8].mxu1 %vm735_vm2, %v891_v44 }
 0x7c7   :  { %974 = vmatpush1.bf16.msra.mxu1 %v2452_v62  ;;  %1005 = vmatprep.mubr.bf16.mxu1 %v2196_v0 }
 0x7c8   :  { %975 = vmatprep.subr.bf16.mxu1 %v2454_v63 }
 0x7cb   :  { %976 = vmatpush1.bf16.msra.mxu1 %v2458_v1 }
 0x7cc   :  { %977 = vmatprep.subr.bf16.mxu1 %v2461_v2 }
 0x7cf   :  { %978 = vmatpush1.bf16.msra.mxu1 %v2464_v3 }
 0x7d0   :  { %979 = vmatprep.subr.bf16.mxu1 %v2468_v7 }
 0x7d3   :  { %980 = vmatpush1.bf16.msra.mxu1 %v2470_v12 }
 0x7d4   :  { %1051 = vmatprep.subr.bf16.mxu1 %v2450_v45 }
 0x899   :  { %v929_v23 = vpop.f32.mrb[8].mxu1 }
 0x89a   :  { %v936_v46 = vadd.f32 %v929_v23, %v2414_v4  ;;  %v931_v47 = vpop.f32.mrb[9].mxu1 }
 0x89b   :  { %v937_v25 = vadd.f32 %v931_v47, %v2418_v9  ;;  %v933_v48 = vpop.f32.mrb[10].mxu1 }
 0x89c   :  { %v934_v49 = vpop.f32.mrb[11].mxu1  ;;  %v1702_v54 = vmul.f32 -1.442695, %v936_v46 }
 0x89d   :  { %1985 = vtanh.f32 %v937_v25  ;;  %v1703_v30 = vmul.f32 -1.442695, %v937_v25 }
 0x89e   :  { %1987 = vpow2.f32 %v1702_v54 }
 0x8a7   :  { %v1986_v52 = vpop.eup %1985 }
 0x8a8   :  { %953 = vrot.lane.b32.xlu1 %v1986_v52, %s2189_s1  ;;  %v1988_v56 = vpop.eup %1987 }
 0x8a9   :  { %v944_v58 = vadd.f32 1.0, %v1988_v56 }
 0x8ab   :  { %1989 = vrcp.f32 %v944_v58 }
 0x8b5   :  { %v1990_v28 = vpop.eup %1989 }
 0x8b6   :  { %v951_v4 = vmul.f32 %v1990_v28, %v883_v36 }
 0x91a   :  { %v954_v42 = vpop.permute.xlu1 %953 }
 0x91b   :  { %v956_v59 = vmul.f32 %v1990_v28, %v954_v42 }
 0x91d   :  { %958 = vrot.lane.b32.xlu0 %v956_v59, %s2189_s1 }
 0x98f   :  { %v959_v60 = vpop.permute.xlu0 %958 }
 0x990   :  { %v961_v61 = vadd.f32 %v959_v60, %v951_v4 }
 0x992   :  { %1991 = vtanh.f32 %v961_v61 }
 0x993   :  { %1993 = vpow2.f32 %v1703_v30 }
 0x99c   :  { %v1992_v9 = vpop.eup %1991 }
 0x99d   :  { %964 = vrot.lane.b32.xlu1 %v1992_v9, %s2189_s1  ;;  %v1994_v6 = vpop.eup %1993 }
 0x99e   :  { %v945_v8 = vadd.f32 1.0, %v1994_v6 }
 0x9a0   :  { %1995 = vrcp.f32 %v945_v8 }
 0x9aa   :  { %v1996_v13 = vpop.eup %1995 }
 0xa0f   :  { %v965_v14 = vpop.permute.xlu1 %964 }
 0xa10   :  { %v967_v17 = vmul.f32 %v1996_v13, %v965_v14 }
 0xa12   :  { %v2524_v18 = vmax.f32 %v890_v34, %v967_v17  ;;  %v969_v21 = vpack.c.bf16 %v967_v17, %v967_v17 }
 0xa14   :  { %1704 = vmatmul.mubr.msk.bf16.vlgmr.msra.gmra.mrb[12].mxu1 %vm735_vm2, %v969_v21 }
 0xa15   :  { %1052 = vmatpush1.bf16.msra.mxu1 %v2452_v62  ;;  %1083 = vmatprep.mubr.bf16.mxu1 %v2196_v0 }
 0xa16   :  { %1053 = vmatprep.subr.bf16.mxu1 %v2454_v63 }
 0xa19   :  { %1054 = vmatpush1.bf16.msra.mxu1 %v2458_v1 }
 0xa1a   :  { %1055 = vmatprep.subr.bf16.mxu1 %v2461_v2 }
 0xa1d   :  { %1056 = vmatpush1.bf16.msra.mxu1 %v2464_v3 }
 0xa1e   :  { %1057 = vmatprep.subr.bf16.mxu1 %v2468_v7 }
 0xa21   :  { %1058 = vmatpush1.bf16.msra.mxu1 %v2470_v12 }
 0xa22   :  { %1129 = vmatprep.subr.bf16.mxu1 %v2450_v45 }
 0xae7   :  { %v1007_v22 = vpop.f32.mrb[12].mxu1 }
 0xae8   :  { %v1014_v27 = vadd.f32 %v1007_v22, %v2416_v5  ;;  %v1009_v29 = vpop.f32.mrb[13].mxu1 }
 0xae9   :  { %v1015_v31 = vadd.f32 %v1009_v29, %v2420_v11  ;;  %v1011_v33 = vpop.f32.mrb[14].mxu1 }
 0xaea   :  { %v1012_v15 = vpop.f32.mrb[15].mxu1  ;;  %v1705_v36 = vmul.f32 -1.442695, %v1014_v27 }
 0xaeb   :  { %1997 = vtanh.f32 %v1015_v31  ;;  %v1706_v34 = vmul.f32 -1.442695, %v1015_v31 }
 0xaec   :  { %1999 = vpow2.f32 %v1705_v36 }
 0xaf5   :  { %v1998_v35 = vpop.eup %1997 }
 0xaf6   :  { %1031 = vrot.lane.b32.xlu0 %v1998_v35, %s2189_s1  ;;  %v2000_v19 = vpop.eup %1999 }
 0xaf7   :  { %v1022_v32 = vadd.f32 1.0, %v2000_v19 }
 0xaf9   :  { %2001 = vrcp.f32 %v1022_v32 }
 0xb03   :  { %v2002_v37 = vpop.eup %2001 }
 0xb04   :  { %v1029_v5 = vmul.f32 %v2002_v37, %v961_v61 }
 0xb68   :  { %v1032_v38 = vpop.permute.xlu0 %1031 }
 0xb69   :  { %v1034_v40 = vmul.f32 %v2002_v37, %v1032_v38 }
 0xb6b   :  { %1036 = vrot.lane.b32.xlu1 %v1034_v40, %s2189_s1 }
 0xbdd   :  { %v1037_v41 = vpop.permute.xlu1 %1036 }
 0xbde   :  { %v1039_v43 = vadd.f32 %v1037_v41, %v1029_v5 }
 0xbe0   :  { %2003 = vtanh.f32 %v1039_v43 }
 0xbe1   :  { %2005 = vpow2.f32 %v1706_v34 }
 0xbea   :  { %v2004_v11 = vpop.eup %2003 }
 0xbeb   :  { %1042 = vrot.lane.b32.xlu0 %v2004_v11, %s2189_s1  ;;  %v2006_v44 = vpop.eup %2005 }
 0xbec   :  { %v1023_v23 = vadd.f32 1.0, %v2006_v44 }
 0xbee   :  { %2007 = vrcp.f32 %v1023_v23 }
 0xbf8   :  { %v2008_v46 = vpop.eup %2007 }
 0xc5d   :  { %v1043_v47 = vpop.permute.xlu0 %1042 }
 0xc5e   :  { %v1045_v25 = vmul.f32 %v2008_v46, %v1043_v47 }
 0xc60   :  { %v1046_v48 = vmax.f32 %v2524_v18, %v1045_v25  ;;  %v1047_v49 = vpack.c.bf16 %v1045_v25, %v1045_v25 }
 0xc62   :  { %1707 = vmatmul.mubr.msk.bf16.vlgmr.msra.gmra.mrb[16].mxu1 %vm735_vm2, %v1047_v49 }
 0xc63   :  { %1130 = vmatpush1.bf16.msra.mxu1 %v2452_v62  ;;  %1161 = vmatprep.mubr.bf16.mxu1 %v2196_v0 }
 0xc64   :  { %1131 = vmatprep.subr.bf16.mxu1 %v2454_v63 }
 0xc67   :  { %1132 = vmatpush1.bf16.msra.mxu1 %v2458_v1 }
 0xc68   :  { %1133 = vmatprep.subr.bf16.mxu1 %v2461_v2 }
 0xc6b   :  { %1134 = vmatpush1.bf16.msra.mxu1 %v2464_v3 }
 0xc6c   :  { %1135 = vmatprep.subr.bf16.mxu1 %v2468_v7 }
 0xc6f   :  { %1136 = vmatpush1.bf16.msra.mxu1 %v2470_v12 }
 0xc70   :  { %1207 = vmatprep.subr.bf16.mxu1 %v2450_v45 }
 0xd35   :  { %v1085_v52 = vpop.f32.mrb[16].mxu1 }
 0xd36   :  { %v1092_v54 = vadd.f32 %v1085_v52, %v2424_v16  ;;  %v1087_v56 = vpop.f32.mrb[17].mxu1 }
 0xd37   :  { %v1093_v58 = vadd.f32 %v1087_v56, %v2428_v20  ;;  %v1089_v28 = vpop.f32.mrb[18].mxu1 }
 0xd38   :  { %v1090_v42 = vpop.f32.mrb[19].mxu1  ;;  %v1708_v4 = vmul.f32 -1.442695, %v1092_v54 }
 0xd39   :  { %2009 = vtanh.f32 %v1093_v58  ;;  %v1709_v13 = vmul.f32 -1.442695, %v1093_v58 }
 0xd3a   :  { %2011 = vpow2.f32 %v1708_v4  ;;  %v1928_v4 = vld [vmem:[#allocation10] sm:$0xff]  }
 0xd43   :  { %v2010_v59 = vpop.eup %2009 }
 0xd44   :  { %1109 = vrot.lane.b32.xlu1 %v2010_v59, %s2189_s1  ;;  %v2012_v60 = vpop.eup %2011 }
 0xd45   :  { %v1100_v61 = vadd.f32 1.0, %v2012_v60  ;;  %v2197_v60 = vmov 0.0  }
 0xd46   :  { %1776 = vmatprep.subr.bf16.mxu0 %v2197_v60  ;;  %1784 = vmatprep.mubr.msk.bf16.mxu0 %vm2198_vm3, %v2197_v60 }
 0xd47   :  { %2013 = vrcp.f32 %v1100_v61  ;;  %v1929_v61 = vld [vmem:[#allocation8 + $0x48] sm:$0xff]   ;;  %1777 = vmatpush3.bf16.msra.mxu0 %v1928_v4 }
 0xd48   :  { %1778 = vmatprep.subr.bf16.mxu0 %v2197_v60 }
 0xd51   :  { %v2014_v9 = vpop.eup %2013 }
 0xd52   :  { %v1107_v16 = vmul.f32 %v2014_v9, %v1039_v43 }
 0xdb6   :  { %v1110_v30 = vpop.permute.xlu1 %1109 }
 0xdb7   :  { %v1112_v45 = vmul.f32 %v2014_v9, %v1110_v30  ;;  %v1933_v9 = vld [vmem:[#allocation10 + $0x8] sm:$0xff]   ;;  %v1930_v30 = vld [vmem:[#allocation8 + $0x8] sm:$0xff]  }
 0xdb8   :  { %1779 = vmatpush3.bf16.msra.mxu0 %v1933_v9 }
 0xdb9   :  { %1114 = vrot.lane.b32.xlu0 %v1112_v45, %s2189_s1  ;;  %v1931_v45 = vld [vmem:[#allocation8 + $0x50] sm:$0xff]   ;;  %1780 = vmatprep.subr.bf16.mxu0 %v2197_v60 }
 0xe2b   :  { %v1115_v6 = vpop.permute.xlu0 %1114 }
 0xe2c   :  { %v1117_v8 = vadd.f32 %v1115_v6, %v1107_v16  ;;  %v1938_v16 = vld [vmem:[#allocation10 + $0x10] sm:$0xff]   ;;  %v1932_v6 = vld [vmem:[#allocation8 + $0x10] sm:$0xff]  }
 0xe2d   :  { %1781 = vmatpush3.bf16.msra.mxu0 %v1938_v16 }
 0xe2e   :  { %2015 = vtanh.f32 %v1117_v8  ;;  %1782 = vmatprep.subr.bf16.mxu0 %v2197_v60 }
 0xe2f   :  { %2017 = vpow2.f32 %v1709_v13  ;;  %v1935_v13 = vld [vmem:[#allocation8 + $0x18] sm:$0xff]  }
 0xe38   :  { %v2016_v20 = vpop.eup %2015 }
 0xe39   :  { %1120 = vrot.lane.b32.xlu1 %v2016_v20, %s2189_s1  ;;  %v2018_v14 = vpop.eup %2017  ;;  %v1943_v20 = vld [vmem:[#allocation10 + $0x18] sm:$0xff]  }
 0xe3a   :  { %v1101_v17 = vadd.f32 1.0, %v2018_v14  ;;  %v1936_v14 = vld [vmem:[#allocation8 + $0x60] sm:$0xff]   ;;  %1783 = vmatpush3.bf16.msra.mxu0 %v1943_v20 }
 0xe3b   :  { %1788 = vmatprep.subr.bf16.mxu0 %v2197_v60 }
 0xe3c   :  { %2019 = vrcp.f32 %v1101_v17  ;;  %v1937_v17 = vld [vmem:[#allocation8 + $0x20] sm:$0xff]  }
 0xe46   :  { %v2020_v18 = vpop.eup %2019 }
 0xeab   :  { %v1121_v21 = vpop.permute.xlu1 %1120 }
 0xeac   :  { %v1123_v22 = vmul.f32 %v2020_v18, %v1121_v21  ;;  %v1939_v18 = vld [vmem:[#allocation8 + $0x68] sm:$0xff]  }
 0xead   :  { %v1940_v21 = vld [vmem:[#allocation8 + $0x28] sm:$0xff]  }
 0xeae   :  { %v2557_v27 = vmax.f32 %v1046_v48, %v1123_v22  ;;  %v1125_v29 = vpack.c.bf16 %v1123_v22, %v1123_v22  ;;  %v1941_v22 = vld [vmem:[#allocation8 + $0x70] sm:$0xff]  }
 0xeb0   :  { %1710 = vmatmul.mubr.msk.bf16.vlgmr.msra.gmra.mrb[20].mxu1 %vm735_vm2, %v1125_v29  ;;  %v1942_v29 = vld [vmem:[#allocation8 + $0x30] sm:$0xff]  }
 0xeb1   :  { %1208 = vmatpush1.bf16.msra.mxu1 %v2452_v62  ;;  %1239 = vmatprep.mubr.bf16.mxu1 %v2196_v0 }
 0xeb2   :  { %1209 = vmatprep.subr.bf16.mxu1 %v2454_v63 }
 0xeb5   :  { %1210 = vmatpush1.bf16.msra.mxu1 %v2458_v1 }
 0xeb6   :  { %1211 = vmatprep.subr.bf16.mxu1 %v2461_v2 }
 0xeb9   :  { %1212 = vmatpush1.bf16.msra.mxu1 %v2464_v3 }
 0xeba   :  { %1213 = vmatprep.subr.bf16.mxu1 %v2468_v7 }
 0xebd   :  { %1214 = vmatpush1.bf16.msra.mxu1 %v2470_v12 }
 0xf83   :  { %v1163_v31 = vpop.f32.mrb[20].mxu1 }
 0xf84   :  { %v1170_v33 = vadd.f32 %v1163_v31, %v2437_v24  ;;  %v1165_v15 = vpop.f32.mrb[21].mxu1  ;;  %v1944_v31 = vld [vmem:[#allocation8 + $0x78] sm:$0xff]  }
 0xf85   :  { %v1171_v62 = vadd.f32 %v1165_v15, %v2442_v26  ;;  %v1167_v35 = vpop.f32.mrb[22].mxu1 }
 0xf86   :  { %v1168_v36 = vpop.f32.mrb[23].mxu1  ;;  %v1711_v1 = vmul.f32 -1.442695, %v1170_v33  ;;  %v651_v33 = vmax.bf16 %v2352_v39, %v2380_v10 }
 0xf87   :  { %2021 = vtanh.f32 %v1171_v62  ;;  %v1712_v38 = vmul.f32 -1.442695, %v1171_v62  ;;  %v1945_v62 = vld [vmem:[#allocation8 + $0x38] sm:$0xff]  }
 0xf88   :  { %2023 = vpow2.f32 %v1711_v1  ;;  %v653_v35 = vmax.bf16 %v2196_v0, %v651_v33 }
 0xf8a   :  { %v1722_v1 = vcombine.high %v653_v35, %v653_v35 }
 0xf91   :  { %v2022_v63 = vpop.eup %2021 }
 0xf92   :  { %1187 = vrot.lane.b32.xlu0 %v2022_v63, %s2189_s1  ;;  %v2024_v2 = vpop.eup %2023 }
 0xf93   :  { %v1178_v3 = vadd.f32 1.0, %v2024_v2  ;;  %v1721_v2 = vcombine.low %v653_v35, %v653_v35 }
 0xf95   :  { %2025 = vrcp.f32 %v1178_v3 }
 0xf9f   :  { %v2026_v7 = vpop.eup %2025 }
 0xfa0   :  { %v1185_v24 = vmul.f32 %v2026_v7, %v1117_v8  ;;  %v1934_v8 = vld [vmem:[#allocation8 + $0x58] sm:$0xff]  }
0x1004   :  { %v1188_v19 = vpop.permute.xlu0 %1187 }
0x1005   :  { %v1190_v12 = vmul.f32 %v2026_v7, %v1188_v19 }
0x1007   :  { %1192 = vrot.lane.b32.xlu1 %v1190_v12, %s2189_s1 }
0x1079   :  { %v1193_v32 = vpop.permute.xlu1 %1192 }
0x107a   :  { %v2572_v37 = vadd.f32 %v1193_v32, %v1185_v24 }
0x107c   :  { %2027 = vtanh.f32 %v2572_v37 }
0x107d   :  { %2029 = vpow2.f32 %v1712_v38  ;;  %v1947_v38 = vld [vmem:[#allocation8 + $0x88] sm:$0xff]  }
0x1086   :  { %v2028_v26 = vpop.eup %2027 }
0x1087   :  { %1198 = vrot.lane.b32.xlu0 %v2028_v26, %s2189_s1  ;;  %v2030_v40 = vpop.eup %2029 }
0x1088   :  { %v1179_v5 = vadd.f32 1.0, %v2030_v40  ;;  %v1948_v40 = vld [vmem:[#allocation8 + $0x90] sm:$0x3f]  }
0x108a   :  { %2031 = vrcp.f32 %v1179_v5  ;;  %v654_v5 = vmax.bf16 %v2196_v0, %v652_v53  ;;  %v1744_v53 = vld [vmem:[%s2639_s7] ss:$0 sm:$0xff] }
0x1094   :  { %v2032_v41 = vpop.eup %2031 }
0x10f9   :  { %v1199_v43 = vpop.permute.xlu0 %1198 }
0x10fa   :  { %v2576_v11 = vmul.f32 %v2032_v41, %v1199_v43  ;;  %v1723_v41 = vcombine.low %v654_v5, %v654_v5 }
0x10fc   :  { %v1202_v34 = vmax.f32 %v2557_v27, %v2576_v11  ;;  %v1203_v44 = vpack.c.bf16 %v2576_v11, %v2576_v11  ;;  %v1522_v27 = vsel %vm426_vm0, %v1948_v40, 0 }
0x10fe   :  { %1713 = vmatmul.mubr.msk.bf16.vlgmr.msra.gmra.mrb[24].mxu1 %vm735_vm2, %v1203_v44 }
0x10ff   :  { %1556 = vmatprep.mubr.bf16.mxu1 %v1722_v1 }
0x11d1   :  { %v1241_v23 = vpop.f32.mrb[24].mxu1 }
0x11d2   :  { %v1248_v46 = vadd.f32 %v1241_v23, %v2444_v55  ;;  %v1243_v47 = vpop.f32.mrb[25].mxu1  ;;  %v1926_v55 = vld [vmem:[#allocation8 + $0x40] sm:$0xff]  }
0x11d3   :  { %v2585_v25 = vadd.f32 %v1243_v47, %v2446_v57  ;;  %v1245_v48 = vpop.f32.mrb[26].mxu1  ;;  %v1927_v57 = vld [vmem:[#allocation8] sm:$0xff]   ;;  %1750 = vmatprep.subr.bf16.mxu1 %v1926_v55 }
0x11d4   :  { %v1246_v49 = vpop.f32.mrb[27].mxu1  ;;  %v1714_v54 = vmul.f32 -1.442695, %v1248_v46  ;;  %1751 = vmatpush3.bf16.msra.mxu1 %v1927_v57 }
0x11d5   :  { %2033 = vtanh.f32 %v2585_v25  ;;  %1752 = vmatprep.subr.bf16.mxu1 %v1929_v61  ;;  %v1715_v39 = vmul.f32 -1.442695, %v2585_v25 }
0x11d6   :  { %2035 = vpow2.f32 %v1714_v54 }
0x11d8   :  { %1753 = vmatpush3.bf16.msra.mxu1 %v1930_v30 }
0x11d9   :  { %1754 = vmatprep.subr.bf16.mxu1 %v1931_v45 }
0x11dc   :  { %1755 = vmatpush3.bf16.msra.mxu1 %v1932_v6 }
0x11dd   :  { %1756 = vmatprep.subr.bf16.mxu1 %v1934_v8 }
0x11df   :  { %v2034_v52 = vpop.eup %2033 }
0x11e0   :  { %1265 = vrot.lane.b32.xlu1 %v2034_v52, %s2189_s1  ;;  %v2036_v56 = vpop.eup %2035  ;;  %1757 = vmatpush3.bf16.msra.mxu1 %v1935_v13 }
0x11e1   :  { %v1256_v58 = vadd.f32 1.0, %v2036_v56  ;;  %1758 = vmatprep.subr.bf16.mxu1 %v1936_v14 }
0x11e3   :  { %2037 = vrcp.f32 %v1256_v58 }
0x11e4   :  { %1759 = vmatpush3.bf16.msra.mxu1 %v1937_v17 }
0x11e5   :  { %1760 = vmatprep.subr.bf16.mxu1 %v1939_v18 }
0x11e8   :  { %1761 = vmatpush3.bf16.msra.mxu1 %v1940_v21 }
0x11e9   :  { %1762 = vmatprep.subr.bf16.mxu1 %v1941_v22 }
0x11ec   :  { %1763 = vmatpush3.bf16.msra.mxu1 %v1942_v29 }
0x11ed   :  { %v2038_v28 = vpop.eup %2037  ;;  %1764 = vmatprep.subr.bf16.mxu1 %v1944_v31 }
0x11ee   :  { %v1263_v15 = vmul.f32 %v2038_v28, %v2572_v37  ;;  %v1946_v37 = vld [vmem:[#allocation8 + $0x80] sm:$0xff]  }
0x11f0   :  { %1765 = vmatpush3.bf16.msra.mxu1 %v1945_v62 }
0x11f3   :  { %1557 = vmatmul.mubr.bf16.vlgmr.msra.gmra.mrb[28].mxu1 %v1721_v2 }
0x1252   :  { %v1266_v42 = vpop.permute.xlu1 %1265 }
0x1253   :  { %v1268_v59 = vmul.f32 %v2038_v28, %v1266_v42 }
0x1255   :  { %1270 = vrot.lane.b32.xlu0 %v1268_v59, %s2189_s1 }
0x12c6   :  { %v1766_v43 = vpop.f32.mrb[28].mxu1 }
0x12c7   :  { %v1271_v36 = vpop.permute.xlu0 %1270  ;;  %v1767_v11 = vpop.f32.mrb[29].mxu1 }
0x12c8   :  { %v1273_v63 = vadd.f32 %v1271_v36, %v1263_v15  ;;  %v1769_v44 = vpop.f32.mrb[30].mxu1 }
0x12c9   :  { %v1770_v23 = vpop.f32.mrb[31].mxu1 }
0x12ca   :  { %2039 = vtanh.f32 %v1273_v63 }
0x12cb   :  { %2041 = vpow2.f32 %v1715_v39 }
0x12d4   :  { %v2040_v3 = vpop.eup %2039 }
0x12d5   :  { %1276 = vrot.lane.b32.xlu1 %v2040_v3, %s2189_s1  ;;  %v2042_v10 = vpop.eup %2041 }
0x12d6   :  { %v1257_v7 = vadd.f32 1.0, %v2042_v10 }
0x12d8   :  { %2043 = vrcp.f32 %v1257_v7 }
0x12e2   :  { %v2044_v19 = vpop.eup %2043 }
0x1347   :  { %v1277_v12 = vpop.permute.xlu1 %1276 }
0x1348   :  { %v1279_v24 = vmul.f32 %v2044_v19, %v1277_v12 }
0x134a   :  { %v1280_v32 = vmax.f32 %v1202_v34, %v1279_v24  ;;  %v1768_v34 = vadd.f32 %v1767_v11, %v1766_v43 }
0x134c   :  { %v1319_v26 = vpack.c.bf16 %v1280_v32, %v1280_v32 }
0x134e   :  { %1785 = vmatmul.mubr.msk.bf16.vlgmr.msra.gmra.mrb[16].mxu0 %vm735_vm2, %v1319_v26 }
0x134f   :  { %1789 = vmatpush3.bf16.msra.mxu0 %v1946_v37  ;;  %1794 = vmatprep.mubr.msk.bf16.mxu0 %vm2198_vm3, %v2197_v60 }
0x1350   :  { %1790 = vmatprep.subr.bf16.mxu0 %v2197_v60 }
0x1353   :  { %1791 = vmatpush3.bf16.msra.mxu0 %v1947_v38 }
0x1354   :  { %1792 = vmatprep.subr.bf16.mxu0 %v2197_v60 }
0x1357   :  { %1793 = vmatpush3.bf16.msra.mxu0 %v1522_v27 }
0x135a   :  { %1795 = vmatmul.mubr.msk.bf16.vlgmr.msra.gmra.mrb[20].mxu0 %vm413_vm1, %v1723_v41 }
0x1421   :  { %v1389_v46 = vpop.f32.mrb[16].mxu0 }
0x1422   :  { %v1559_v47 = vadd.f32 %v1768_v34, %v1389_v46  ;;  %v1786_v25 = vpop.f32.mrb[17].mxu0 }
0x1423   :  { %v1392_v50 = vpop.f32.mrb[18].mxu0 }
0x1424   :  { %v1787_v51 = vpop.f32.mrb[19].mxu0 }
0x142d   :  { %v1598_v0 = vpop.f32.mrb[20].mxu0 }
0x142e   :  { %v1599_v48 = vadd.f32 %v1598_v0, %v1559_v47  ;;  %v1796_v49 = vpop.f32.mrb[21].mxu0 }
0x142f   :  { %v1601_v52 = vpop.f32.mrb[22].mxu0 }
0x1430   :  { %v1611_v54 = vadd.f32 %v1744_v53, %v1599_v48  ;;  %v1797_v56 = vpop.f32.mrb[23].mxu0 }
0x1432   :  { %1612 = vst [vmem:[#allocation11] sm:$0xff] %v1611_v54 }
0x1433   :  { %2166 = shalt.err (!%p2163_p2)
}
0x1434   :  { %s2167_s7 = scalar_lea.hbm %s2640_s8, 128 }
0x1435   :  { %p2168_p3 = scmp.ne.s32.totalorder %s2640_s8, %s2167_s7  ;;  %p2171_p4 = scmp.lt.u32.totalorder %s2167_s7, %s2640_s8 }
0x1437   :  { %p2173_p5 = pnand %p2171_p4, %p2168_p3 }
0x1439   :  { %2176 = shalt.err (!%p2173_p5)
}
0x143a   :  { %1622 = dma.vmem_to_hbm [thread:$0]  %s1620_s27, 128, %s2640_s8, [#allocation4]  }
0x143b   :  { %2183 = dma.done.wait [#allocation4], 128  }
0x143c   :  { %2184 = vsyncadd [#allocation4], 4294967168 }
0x143d   :  { %1626 = vsyncpa [#allocation3], 1 }
0x143e   :  { %1627 = vsyncpa [#allocation6], 1 }
0x143f   :  { %1628 = vsyncpa [#allocation9], 1 }
0x1440   :  { %1629 = vsyncpa [#allocation4], 1 }

</bundles_post_ra>
